<compile_context>
chip_gen: v7x
topology: tpu7x:2x2x1
jax: 0.10.0
libtpu: 0.0.40
codegen_flags: <defaults>
</compile_context>

<pallas_src>
import numpy as np
import jax
import jax.numpy as jnp
from jax.experimental import pallas as pl
from jax.experimental.pallas import tpu as pltpu

D_MODEL = 64
MAX_LEN = 5000

LANE = 128                 # TPU lane width
ROW_TILE = 2048            # rows of the lane-dense (rows, 128) view per grid step (1 MiB f32)
FAST_PATH_BYTES = 256 * 1024   # below this, skip pallas_call entirely


def _cdiv(a: int, b: int) -> int:
    return -(-a // b)


def _round_up(a: int, b: int) -> int:
    return _cdiv(a, b) * b


def make_positional_encoding(d_model: int, max_len: int) -> jnp.ndarray:
    """Replicates the PyTorch __init__ exactly: pe shape (1, max_len, d_model), float32."""
    position = jnp.arange(0, max_len, dtype=jnp.float32)[:, None]            # (max_len, 1)
    div_term = jnp.exp(
        jnp.arange(0, d_model, 2, dtype=jnp.float32)
        * -(np.log(10000.0) / d_model)
    )                                                                         # (d_model//2,)
    pe = jnp.zeros((max_len, d_model), dtype=jnp.float32)
    pe = pe.at[:, 0::2].set(jnp.sin(position * div_term))
    pe = pe.at[:, 1::2].set(jnp.cos(position * div_term))
    return pe[None, :, :]                                                     # (1, max_len, d_model)


def _pos_enc_kernel(x_ref, pe_ref, o_ref):
    # x_ref, pe_ref, o_ref: (tile_rows, lane_width) lane-dense 2-D tiles.
    # x may be a narrower dtype; add promotes to pe's f32 and stores at o's dtype.
    o_ref[...] = (x_ref[...] + pe_ref[...]).astype(o_ref.dtype)


class PositionalEncoding:
    """Registered-buffer style holder: pe built once, folded layout cached once."""

    def __init__(self, d_model: int, max_len: int = 5000):
        self.d_model = d_model
        self.max_len = max_len
        self.pe = make_positional_encoding(d_model, max_len)                 # (1, max_len, d_model) f32

        # Lane-dense folding factor: pack `fold` consecutive sequence positions
        # into one 128-wide lane row (fold = 2 for d_model = 64).
        if d_model < LANE and LANE % d_model == 0 and max_len % (LANE // d_model) == 0:
            self.fold = LANE // d_model
        else:
            # Falls back to a d_model-wide lane layout (masked stores) — correct
            # but slower; only hit if 128 % d_model != 0.
            self.fold = 1
        # Pure row-major reinterpretation — no data movement. Cached once.
        self.pe_folded = self.pe[0].reshape(max_len // self.fold, d_model * self.fold)

    def __call__(self, x: jnp.ndarray) -> jnp.ndarray:
        return positional_encoding_forward(x, self.pe, self.pe_folded, self.fold)


def positional_encoding_forward(x: jnp.ndarray, pe: jnp.ndarray,
                                pe_folded: jnp.ndarray, fold: int) -> jnp.ndarray:
    """x: (B, S, D); pe: (1, max_len, D) f32; pe_folded: (max_len//fold, D*fold) f32."""
    B, S, D = x.shape
    out_dtype = jnp.promote_types(x.dtype, pe.dtype)   # matches torch's x + pe promotion
    itemsize_in = jnp.dtype(x.dtype).itemsize
    itemsize_out = jnp.dtype(out_dtype).itemsize

    # Tiny-input fast path: kernel launch + per-step overhead beats any tiling win.
    if B * S * D * itemsize_out <= FAST_PATH_BYTES:
        return (x + pe[:, :S, :]).astype(out_dtype)

    S_even = (S // fold) * fold
    rows = S_even // fold
    lane_w = D * fold

    if rows == 0:
        return (x + pe[:, :S, :]).astype(out_dtype)

    # Lane-dense view of the foldable prefix (row-major reinterpretation).
    if S_even == S:
        x_prefix = x.reshape(B, rows, lane_w)
    else:
        x_prefix = x[:, :S_even, :].reshape(B, rows, lane_w)
    pe_rows = pe_folded[:rows]                                               # (rows, lane_w) f32, tiny

    tile_rows = min(rows, ROW_TILE)
    n_row_tiles = _cdiv(rows, tile_rows)
    # v7x: make sure both TensorCores get work when B == 1 and rows fit one tile.
    if B * n_row_tiles < 2 and rows >= 16:
        tile_rows = _round_up(_cdiv(rows, 2), 8)
        n_row_tiles = _cdiv(rows, tile_rows)

    bytes_accessed = (B * rows * lane_w) * (itemsize_in + itemsize_out) + rows * lane_w * 4

    out_prefix = pl.pallas_call(
        _pos_enc_kernel,
        out_shape=jax.ShapeDtypeStruct((B, rows, lane_w), out_dtype),
        grid_spec=pltpu.PrefetchScalarGridSpec(
            num_scalar_prefetch=0,
            # Batch innermost: pe's block index (r, 0) is constant across the
            # inner B steps, so Pallas skips re-DMAing pe for every batch element.
            grid=(n_row_tiles, B),
            in_specs=[
                # x: squeezed batch dim -> kernel sees a 2-D (tile_rows, lane_w) tile.
                pl.BlockSpec((pl.Squeezed(), tile_rows, lane_w),
                             lambda r, b: (b, r, 0)),
                # pe: batch-independent index_map (broadcast across batch).
                pl.BlockSpec((tile_rows, lane_w),
                             lambda r, b: (r, 0)),
            ],
            out_specs=pl.BlockSpec((pl.Squeezed(), tile_rows, lane_w),
                                   lambda r, b: (b, r, 0)),
        ),
        compiler_params=pltpu.CompilerParams(
            dimension_semantics=("parallel", "parallel"),
        ),
        cost_estimate=pl.CostEstimate(
            flops=B * rows * lane_w,
            transcendentals=0,
            bytes_accessed=bytes_accessed,
        ),
    )(x_prefix, pe_rows)

    out = out_prefix.reshape(B, S_even, D)
    if S_even != S:
        # TODO(synk): the <= (fold-1) leftover positions could instead be handled
        # in-kernel with a masked store on a final partial block to avoid the concat.
        tail = (x[:, S_even:, :] + pe[:, S_even:S, :]).astype(out_dtype)
        out = jnp.concatenate([out, tail], axis=1)
    return out


if __name__ == "__main__":
    key = jax.random.PRNGKey(0)
    pos_enc = PositionalEncoding(D_MODEL, MAX_LEN)
    pe = pos_enc.pe

    # 1) Small test — matches the module's expected usage (tiny-input fast path).
    B, S = 2, 8
    x = jax.random.normal(key, (B, S, D_MODEL), dtype=jnp.float32)
    out = jax.block_until_ready(pos_enc(x))
    ref = x + pe[:, :S]
    assert out.shape == (B, S, D_MODEL) and out.dtype == jnp.float32
    np.testing.assert_allclose(np.asarray(out), np.asarray(ref), rtol=1e-6, atol=1e-6)

    # 2) Larger even sequence: exercises the Pallas kernel path with multiple
    #    row tiles (incl. a partial trailing block) and batch-inner pe reuse.
    S2 = 4992
    x2 = jax.random.normal(jax.random.PRNGKey(1), (B, S2, D_MODEL), dtype=jnp.float32)
    out2 = jax.block_until_ready(pos_enc(x2))
    ref2 = x2 + pe[:, :S2]
    np.testing.assert_allclose(np.asarray(out2), np.asarray(ref2), rtol=1e-6, atol=1e-6)

    # 3) Odd sequence length, B=1: exercises the even-prefix kernel + XLA tail
    #    path and the two-TensorCore row-split heuristic.
    S3 = 2049
    x3 = jax.random.normal(jax.random.PRNGKey(2), (1, S3, D_MODEL), dtype=jnp.float32)
    out3 = jax.block_until_ready(pos_enc(x3))
    ref3 = x3 + pe[:, :S3]
    np.testing.assert_allclose(np.asarray(out3), np.asarray(ref3), rtol=1e-6, atol=1e-6)

    print("KERNEL_OK")
</pallas_src>

<mosaic_0001>
module attributes {stable_mosaic.version = 11 : i64} {
  func.func @_pos_enc_kernel(%arg0: i32, %arg1: i32, %arg2: memref<1x2048x128xf32, #tpu.memory_space<vmem>>, %arg3: memref<2048x128xf32, #tpu.memory_space<vmem>>, %arg4: memref<1x2048x128xf32, #tpu.memory_space<vmem>>) attributes {dimension_semantics = [#tpu.dimension_semantics<parallel>, #tpu.dimension_semantics<parallel>], iteration_bounds = array<i64: 2, 2>, scalar_prefetch = 0 : i64, scratch_operands = 0 : i64, tpu.core_type = #tpu.core_type<tc>, window_params = [{transform_indices = @transform_0, window_bounds = array<i64: 1, 2048, 128>}, {transform_indices = @transform_1, window_bounds = array<i64: 2048, 128>}, {transform_indices = @transform_2, window_bounds = array<i64: 1, 2048, 128>}]} {
    %c0 = arith.constant 0 : index
    %c0_0 = arith.constant 0 : index
    %c0_1 = arith.constant 0 : index
    %0 = vector.load %arg2[%c0, %c0_0, %c0_1] : memref<1x2048x128xf32, #tpu.memory_space<vmem>>, vector<1x2048x128xf32>
    %1 = vector.shape_cast %0 : vector<1x2048x128xf32> to vector<2048x128xf32>
    %c0_2 = arith.constant 0 : index
    %c0_3 = arith.constant 0 : index
    %2 = vector.load %arg3[%c0_2, %c0_3] : memref<2048x128xf32, #tpu.memory_space<vmem>>, vector<2048x128xf32>
    %3 = arith.addf %1, %2 : vector<2048x128xf32>
    %c0_4 = arith.constant 0 : index
    %c0_5 = arith.constant 0 : index
    %c0_6 = arith.constant 0 : index
    %4 = vector.load %arg4[%c0_4, %c0_5, %c0_6] : memref<1x2048x128xf32, #tpu.memory_space<vmem>>, vector<1x2048x128xf32>
    %5 = vector.shape_cast %4 : vector<1x2048x128xf32> to vector<2048x128xf32>
    %6 = vector.shape_cast %3 : vector<2048x128xf32> to vector<1x2048x128xf32>
    tpu.vector_store %arg4[%c0_4, %c0_5, %c0_6], %6 {strides = array<i32>} : memref<1x2048x128xf32, #tpu.memory_space<vmem>>, vector<1x2048x128xf32>,
    return
  }
  func.func @transform_0(%arg0: i32, %arg1: i32) -> (i32, i32, i32) {
    %c0_i32 = arith.constant 0 : i32
    %c0_i32_0 = arith.constant 0 : i32
    return %arg1, %arg0, %c0_i32 : i32, i32, i32
  }
  func.func @transform_1(%arg0: i32, %arg1: i32) -> (i32, i32) {
    %c0_i32 = arith.constant 0 : i32
    %c0_i32_0 = arith.constant 0 : i32
    return %arg0, %c0_i32 : i32, i32
  }
  func.func @transform_2(%arg0: i32, %arg1: i32) -> (i32, i32, i32) {
    %c0_i32 = arith.constant 0 : i32
    %c0_i32_0 = arith.constant 0 : i32
    return %arg1, %arg0, %c0_i32 : i32, i32, i32
  }
}

</mosaic_0001>

<bundles_post_ra>
// kernel: tpu_custom_call.1
= control target key start
LH: loop header
LB: loop body
LE: loop exit
PB: predicated region body
PF: predicated region fallthrough
CT: control target
= control target key end

     0   :  { %7 = vsyncpa [#allocation3], 0  ;;  %s2844_s0 = inlined_call_operand.hbm [shape: f32[2,2496,128], index: 0, kind: input, shape index: {}]   ;;  %s2845_s1 = inlined_call_operand.hbm [shape: f32[2496,128], index: 1, kind: input, shape index: {}]   ;;  %s2846_s2 = inlined_call_operand.hbm [shape: f32[2,2496,128], index: 2, kind: output, shape index: {}]  }
   0x1   :  { %9 = vsyncpa [#allocation3 + $0x1], 0 }
   0x2   :  { %10 = vsyncpa [#allocation6], 0 }
   0x3   :  { %12 = vsyncpa [#allocation6 + $0x1], 0 }
   0x4   :  { %13 = vsyncpa [#allocation4], 0 }
   0x5   :  { %15 = vsyncpa [#allocation4 + $0x1], 0  ;;  %s1750_s9 = smov 0   ;;  %s1752_s10 = smov 0  }
   0x6   :  { %s1754_s11 = smov 0   ;;  %s1756_s12 = smov 0  }
   0x7   :  { %s1758_s13 = smov 0   ;;  %s1760_s14 = smov 0  }
   0x8   :  { %s1762_s15 = smov 0   ;;  %s1764_s16 = smov 0  }
   0x9   :  { %s1766_s17 = smov 0   ;;  %s1768_s18 = smov 0  }
   0xa   :  { %s1770_s19 = smov 0  }
   0xb LB: > { %2852 = sst [smem:[#allocation11_spill]] %s1704_s14  ;;  %s1406_s20 = sadd.s32 4294967295, %s1724_s19   ;;  %s1724_s19 = sphi %s1770_s19, %s21_s19   ;;  %s1720_s18 = sphi %s1768_s18, %s2881_s18   ;;  %s1716_s17 = sphi %s1766_s17, %s2880_s17   ;;  %s1712_s16 = sphi %s1764_s16, %s2879_s16   ;;  %s1708_s15 = sphi %s1762_s15, %s2878_s15   ;;  %s1704_s14 = sphi %s1760_s14, %s2870_s14   ;;  %s1700_s13 = sphi %s1758_s13, %s2877_s13   ;;  %s1696_s12 = sphi %s1756_s12, %s2876_s12   ;;  %s1692_s11 = sphi %s1754_s11, %s2875_s11   ;;  %s1688_s10 = sphi %s1752_s10, %s2874_s10   ;;  %s1684_s9 = sphi %s1750_s9, %s2873_s9  }
   0xc   : > { %s1407_s21 = sadd.s32 4294967294, %s1724_s19   ;;  %s30_s22 = sadd.s32 1, %s1716_s17 }
   0xd   : > { %s33_s23 = sadd.s32 1, %s1720_s18  ;;  %p31_p0 = scmp.ge.s32.totalorder %s30_s22, 2 }
   0xe   : > { %s42_s24 = sadd.s32 1, %s1704_s14  ;;  %p49_p1 = scmp.ne.s32.totalorder %s1704_s14, %s1700_s13 }
   0xf   : > { %p50_p2 = scmp.eq.s32.totalorder %s1724_s19, 0  ;;  %s2883_s22 = smov (%p31_p0, %s30_s22), 0 }
  0x10   : > { %2853 = sst [smem:[#allocation12_spill]] %s2883_s22  ;;  %s2885_s23 = smov (!%p31_p0, %s33_s23), %s1720_s18 }
  0x11   : > { %s37_s25 = ssub.s32 %s1716_s17, %s2883_s22  ;;  %p1823_p3 = por %p50_p2, %p49_p1 }
  0x12   : > { %p35_p4 = scmp.ge.s32.totalorder %s2885_s23, 2  ;;  %p2847_p5 = scmp.ne.s32.totalorder %s1700_s13, %s1696_s12 }
  0x13   : > { %p1829_p6 = scmp.eq.s32.totalorder %s1406_s20, 0  ;;  %s68_s28 = sadd.s32 1, %s1692_s11 }
  0x14   : > { %s2887_s23 = smov (%p35_p4, %s2885_s23), 0  ;;  %p75_p8 = scmp.ne.s32.totalorder %s1692_s11, %s1688_s10 }
  0x15   : > { %2856 = sst [smem:[#allocation13_spill]] %s2887_s23  ;;  %p1841_p7 = por %p1829_p6, %p2847_p5 }
  0x16   : > { %s38_s30 = ssub.s32 %s1720_s18, %s2887_s23  ;;  %p81_p9 = scmp.ne.s32.totalorder %s1688_s10, %s1684_s9 }
  0x17   : > { %s39_s3 = sor.u32 %s38_s30, %s37_s25  ;;  %p66_p10 = scmp.eq.s32.totalorder %s38_s30, 0 }
  0x18   : > { %p40_p11 = scmp.eq.s32.totalorder %s39_s3, 0  ;;  %p1853_p12 = por %p75_p8, %p50_p2 }
  0x19   : > { %s1858_s5 = scalar_select %p66_p10, %s1692_s11, %s68_s28  }
  0x1a   : > { %s1861_s6 = scalar_select %p40_p11, %s1704_s14, %s42_s24  }
  0x1b   : > { %2859 = sst [smem:[#allocation14_spill]] %s1858_s5  ;;  %p1865_p13 = por %p81_p9, %p1829_p6 }
  0x1c   : > { %2860 = sst [smem:[#allocation15_spill]] %s1861_s6  ;;  %p107_p0 = scmp.eq.s32.totalorder %s1406_s20, 3 }
  0x1d   : > { %s2861_s7 = scalar_select %p1865_p13, 1, 0 }
  0x1e   : > { %p113_p4 = scmp.eq.s32.totalorder %s1407_s21, 3  ;;  %p1872_p5 = por %p107_p0, %p49_p1 }
  0x1f   : > { %p2863_p2 = scmp.ne.s32.totalorder %s1700_s13, %s1696_s12  ;;  %p1409_p10 = scmp.ge.s32.totalorder %s1724_s19, 4 }
  0x20   : > { %s2862_s8 = scalar_select %p1872_p5, 1, 0 }
  0x21   : > { %p1879_p8 = por %p113_p4, %p2863_p2  ;;  %129 = sbr.rel (%p1409_p10) target bundleno = 112 (0x70), region = 16 }
  0x23   : > { %s2864_s9 = scalar_select %p1879_p8, 1, 0 }
  0x28   : > { %132 = sbr.rel (!%p1823_p3) target bundleno = 77 (0x4d), region = 20  ;;  %s133_s20 = sand.u32 (%p1823_p3), 1, %s1704_s14  }
  0x29   : > { %s1411_s21 = sshll.u32 (%p1823_p3), %s1720_s18, 8  ;;  %s1410_s24 = sshll.u32 (%p1823_p3), %s133_s20, 11 }
  0x2a   : > { %s139_s25 = ssub.s32 (%p1823_p3), 312, %s1411_s21  ;;  %s1891_s30 = scalar_lea.sflag (%p1823_p3), [#allocation3], %s133_s20 }
  0x2b   : > { %p140_p1 = scmp.lt.s32.totalorder (%p1823_p3), %s139_s25, 256  ;;  %s137_s3 = scalar_lea.vmem (%p1823_p3), [#allocation2], %s1410_s24 }
  0x2f   : > { %s2889_s25 = smov (!%p140_p1, %s139_s25), 256 }
  0x30   : > { %s1888_s27 = sshll.u32 %s2889_s25, 7 }
  0x31   : > { %s144_s28 = ssub.s32 32768, %s1888_s27 }
  0x32   : > { %145 = vsyncadd %s1891_s30, %s144_s28  ;;  %p1413_p3 = scmp.ne.s32.totalorder %s1888_s27, 0  ;;  %s1438_s26 = smul.u32 312, %s1716_s17 }
  0x33   : > { %s152_s23 = sshll.u32 %s137_s3, 4  ;;  %s1896_s23 = int_to_ptr.vmem [resolvable:$true] %s152_s23 }
  0x34   : > { %s148_s22 = sadd.s32 %s1438_s26, %s1411_s21  ;;  %s1546_s21 = scalar_lea.hbm %s2844_s0, 79872 }
  0x35   : > { %s1414_s6 = sshll.u32 %s148_s22, 7 }
  0x36   : > { %s1901_s5 = scalar_lea.hbm %s2844_s0, %s1414_s6 }
  0x37   : > { %s1542_s20 = scalar_lea.hbm %s1901_s5, %s1888_s27  ;;  %p1547_p0 = scmp.lt.u32.totalorder %s1901_s5, %s2844_s0 }
  0x38   : > { %p1543_p6 = scmp.ne.s32.totalorder %s1901_s5, %s1542_s20  ;;  %p1548_p4 = scmp.lt.u32.totalorder %s1546_s21, %s1542_s20 }
  0x39   : > { %p1550_p10 = scmp.lt.u32.totalorder %s1542_s20, %s1901_s5 }
  0x3a   : > { %p1544_p9 = pnand %p1543_p6, %p1413_p3  ;;  %p1549_p2 = por %p1548_p4, %p1547_p0 }
  0x3c   : > { %p1545_p11 = pneg %p1544_p9  ;;  %p1551_p1 = por %p1550_p10, %p1549_p2 }
  0x3e   : > { %p1552_p8 = pnand %p1551_p1, %p1545_p11 }
  0x40   : > { %1555 = shalt.err (!%p1552_p8)
}
  0x41   : > { %s1556_s14 = scalar_lea.vmem %s1896_s23, %s1888_s27  ;;  %s1726_s6 = smov [#allocation2]  }
  0x42   : > { %p1557_p6 = scmp.ne.s32.totalorder %s1896_s23, %s1556_s14  ;;  %s1560_s26 = sshll.u32 %s1726_s6, 4  ;;  %s1561_s26 = int_to_ptr.vmem [resolvable:$false] %s1560_s26 }
  0x43   : > { %s1562_s25 = scalar_lea.vmem %s1561_s26, 65536  ;;  %p1563_p13 = scmp.lt.s32.totalorder %s1896_s23, %s1561_s26 }
  0x44   : > { %p1558_p9 = pnand %p1557_p6, %p1413_p3  ;;  %p1564_p0 = scmp.lt.s32.totalorder %s1562_s25, %s1556_s14 }
  0x46   : > { %p1559_p5 = pneg %p1558_p9  ;;  %p1565_p4 = por %p1564_p0, %p1563_p13 }
  0x48   : > { %p1566_p2 = pnand %p1565_p4, %p1559_p5 }
  0x4a   : > { %1569 = shalt.err (!%p1566_p2)
}
  0x4b   : > { %s1727_s20 = smov 128   ;;  %s1728_s24 = smov 8  }
  0x4c   : > { %158 = dma.hbm_to_vmem [thread:$0]  (%p1413_p3), %s1901_s5, %s1888_s27, %s1896_s23, %s1891_s30, %s1727_s20, %s1727_s20, %s1728_s24  }
  0x4d PF: > { %161 = sbr.rel (!%p1853_p12) target bundleno = 112 (0x70), region = 24  ;;  %s162_s28 = sand.u32 (%p1853_p12), 1, %s1692_s11  }
  0x4e   : > { %s1418_s21 = sshll.u32 (%p1853_p12), %s1720_s18, 8  ;;  %s1417_s3 = sshll.u32 (%p1853_p12), %s162_s28, 11 }
  0x4f   : > { %s168_s22 = ssub.s32 (%p1853_p12), 312, %s1418_s21  ;;  %s1935_s26 = scalar_lea.sflag (%p1853_p12), [#allocation6], %s162_s28 }
  0x50   : > { %p169_p5 = scmp.lt.s32.totalorder (%p1853_p12), %s168_s22, 256  ;;  %s166_s23 = scalar_lea.vmem (%p1853_p12), [#allocation5], %s1417_s3 }
  0x54   : > { %s2891_s22 = smov (!%p169_p5, %s168_s22), 256 }
  0x55   : > { %s1932_s14 = sshll.u32 %s2891_s22, 7 }
  0x56   : > { %s173_s6 = ssub.s32 32768, %s1932_s14 }
  0x57   : > { %174 = vsyncadd %s1935_s26, %s173_s6  ;;  %p1420_p12 = scmp.ne.s32.totalorder %s1932_s14, 0  ;;  %s1437_s4 = sshll.u32 %s1720_s18, 15 }
  0x58   : > { %s1943_s30 = scalar_lea.hbm %s2845_s1, %s1437_s4  ;;  %s179_s25 = sshll.u32 %s166_s23, 4  ;;  %s1945_s25 = int_to_ptr.vmem [resolvable:$true] %s179_s25 }
  0x59   : > { %s1570_s20 = scalar_lea.hbm %s1943_s30, %s1932_s14  ;;  %s1574_s21 = scalar_lea.hbm %s2845_s1, 39936 }
  0x5a   : > { %p1571_p13 = scmp.ne.s32.totalorder %s1943_s30, %s1570_s20  ;;  %p1575_p11 = scmp.lt.u32.totalorder %s1943_s30, %s2845_s1 }
  0x5b   : > { %p1576_p10 = scmp.lt.u32.totalorder %s1574_s21, %s1570_s20  ;;  %p1578_p6 = scmp.lt.u32.totalorder %s1570_s20, %s1943_s30 }
  0x5c   : > { %p1572_p8 = pnand %p1571_p13, %p1420_p12 }
  0x5d   : > { %p1577_p1 = por %p1576_p10, %p1575_p11 }
  0x5e   : > { %p1573_p3 = pneg %p1572_p8 }
  0x5f   : > { %p1579_p9 = por %p1578_p6, %p1577_p1 }
  0x61   : > { %p1580_p0 = pnand %p1579_p9, %p1573_p3 }
  0x63   : > { %1583 = shalt.err (!%p1580_p0)
}
  0x64   : > { %s1584_s6 = scalar_lea.vmem %s1945_s25, %s1932_s14  ;;  %s1729_s23 = smov [#allocation5]  }
  0x65   : > { %p1585_p4 = scmp.ne.s32.totalorder %s1945_s25, %s1584_s6  ;;  %s1588_s4 = sshll.u32 %s1729_s23, 4  ;;  %s1589_s4 = int_to_ptr.vmem [resolvable:$false] %s1588_s4 }
  0x66   : > { %s1590_s5 = scalar_lea.vmem %s1589_s4, 65536  ;;  %p1591_p13 = scmp.lt.s32.totalorder %s1945_s25, %s1589_s4 }
  0x67   : > { %p1586_p2 = pnand %p1585_p4, %p1420_p12  ;;  %p1592_p8 = scmp.lt.s32.totalorder %s1590_s5, %s1584_s6 }
  0x69   : > { %p1587_p5 = pneg %p1586_p2  ;;  %p1593_p11 = por %p1592_p8, %p1591_p13 }
  0x6b   : > { %p1594_p10 = pnand %p1593_p11, %p1587_p5 }
  0x6d   : > { %1597 = shalt.err (!%p1594_p10)
}
  0x6e   : > { %s1730_s27 = smov 128   ;;  %s1731_s20 = smov 8  }
  0x6f   : > { %185 = dma.hbm_to_vmem [thread:$0]  (%p1420_p12), %s1943_s30, %s1932_s14, %s1945_s25, %s1935_s26, %s1730_s27, %s1730_s27, %s1731_s20  }
  0x70 PF: > { %p1424_p3 = scmp.ge.s32.totalorder %s1724_s19, 1  ;;  %p187_p1 = scmp.lt.s32.totalorder %s1724_s19, 5 }
  0x72   : > { %p188_p6 = pnand %p1424_p3, %p187_p1 }
  0x73   : > { %s1975_s24 = sand.u32 (!%p188_p6), 1, %s1700_s13  }
  0x74   : > { %191 = sbr.rel (%p188_p6) target bundleno = 360 (0x168), region = 28  ;;  %s1425_s28 = sshll.u32 (!%p188_p6), %s1975_s24, 11 }
  0x75   : > { %s194_s21 = scalar_lea.sflag (!%p188_p6), [#allocation3], %s1975_s24  ;;  %s1979_s3 = scalar_lea.vmem (!%p188_p6), [#allocation2], %s1425_s28 }
  0x7b   : > { %1671 = dma.done.wait (%p1841_p7), %s194_s21, 32768  }
  0x7c   : > { %1673 = vsyncadd (%p1841_p7), %s194_s21, 4294934528  ;;  %s202_s14 = sand.u32 1, %s1688_s10   ;;  %p2865_p12 = scmp.ne.s32.totalorder %s2861_s7, 0 }
  0x7d   : > { %s1426_s26 = sshll.u32 %s202_s14, 11  ;;  %s203_s30 = scalar_lea.sflag [#allocation6], %s202_s14 }
  0x7e   : > { %s1986_s25 = scalar_lea.vmem [#allocation5], %s1426_s26 }
  0x7f   : > { %1675 = dma.done.wait (%p2865_p12), %s203_s30, 32768  }
  0x80   : > { %1677 = vsyncadd (%p2865_p12), %s203_s30, 4294934528  ;;  %v247_v0 = vld [vmem:[%s1979_s3] sm:$0xff]  ;;  %v248_v2 = vld [vmem:[%s1979_s3 + $0x8] sm:$0xff]  ;;  %s2001_s29 = scalar_lea.vmem [#allocation7], %s1425_s28  ;;  %s1272_s7 = scalar_lea.sflag [#allocation4], %s1975_s24 }
  0x81   : > { %v503_v1 = vld [vmem:[%s1986_s25] sm:$0xff]  ;;  %v504_v4 = vld [vmem:[%s1986_s25 + $0x8] sm:$0xff]  ;;  %v249_v5 = vld [vmem:[%s1979_s3 + $0x10] sm:$0xff]  ;;  %p2866_p7 = scmp.ne.s32.totalorder %s2862_s8, 0 }
  0x82   : > { %v759_v3 = vadd.f32 %v503_v1, %v247_v0  ;;  %v505_v6 = vld [vmem:[%s1986_s25 + $0x10] sm:$0xff]  ;;  %v760_v7 = vadd.f32 %v504_v4, %v248_v2  ;;  %v250_v9 = vld [vmem:[%s1979_s3 + $0x18] sm:$0xff]  ;;  %v251_v11 = vld [vmem:[%s1979_s3 + $0x20] sm:$0xff]  ;;  %s1429_s22 = sshll.u32 (%p2866_p7), %s1712_s16, 8 }
  0x83   : > { %v761_v8 = vadd.f32 %v505_v6, %v249_v5  ;;  %v506_v10 = vld [vmem:[%s1986_s25 + $0x18] sm:$0xff]  ;;  %v507_v13 = vld [vmem:[%s1986_s25 + $0x20] sm:$0xff]  ;;  %v252_v14 = vld [vmem:[%s1979_s3 + $0x28] sm:$0xff]  ;;  %s1280_s6 = ssub.s32 (%p2866_p7), 312, %s1429_s22 }
  0x84   : > { %1015 = vst [vmem:[%s2001_s29] sm:$0xff] %v759_v3  ;;  %v762_v12 = vadd.f32 %v506_v10, %v250_v9  ;;  %v508_v15 = vld [vmem:[%s1986_s25 + $0x28] sm:$0xff]  ;;  %1016 = vst [vmem:[%s2001_s29 + $0x8] sm:$0xff] %v760_v7  ;;  %v763_v16 = vadd.f32 %v507_v13, %v251_v11  ;;  %v253_v18 = vld [vmem:[%s1979_s3 + $0x30] sm:$0xff]  ;;  %p1281_p9 = scmp.lt.s32.totalorder (%p2866_p7), %s1280_s6, 256 }
  0x85   : > { %1017 = vst [vmem:[%s2001_s29 + $0x10] sm:$0xff] %v761_v8  ;;  %v764_v17 = vadd.f32 %v508_v15, %v252_v14  ;;  %v509_v19 = vld [vmem:[%s1986_s25 + $0x30] sm:$0xff]  ;;  %v254_v20 = vld [vmem:[%s1979_s3 + $0x38] sm:$0xff]  ;;  %v255_v23 = vld [vmem:[%s1979_s3 + $0x40] sm:$0xff] }
  0x86   : > { %1018 = vst [vmem:[%s2001_s29 + $0x18] sm:$0xff] %v762_v12  ;;  %v765_v21 = vadd.f32 %v509_v19, %v253_v18  ;;  %v510_v22 = vld [vmem:[%s1986_s25 + $0x38] sm:$0xff]  ;;  %v511_v24 = vld [vmem:[%s1986_s25 + $0x40] sm:$0xff]  ;;  %1019 = vst [vmem:[%s2001_s29 + $0x20] sm:$0xff] %v763_v16 }
  0x87   : > { %1020 = vst [vmem:[%s2001_s29 + $0x28] sm:$0xff] %v764_v17  ;;  %v766_v25 = vadd.f32 %v510_v22, %v254_v20  ;;  %v767_v26 = vadd.f32 %v511_v24, %v255_v23  ;;  %v256_v27 = vld [vmem:[%s1979_s3 + $0x48] sm:$0xff]  ;;  %v257_v29 = vld [vmem:[%s1979_s3 + $0x50] sm:$0xff]  ;;  %v258_v32 = vld [vmem:[%s1979_s3 + $0x58] sm:$0xff] }
  0x88   : > { %v512_v28 = vld [vmem:[%s1986_s25 + $0x48] sm:$0xff]  ;;  %1021 = vst [vmem:[%s2001_s29 + $0x30] sm:$0xff] %v765_v21  ;;  %v513_v31 = vld [vmem:[%s1986_s25 + $0x50] sm:$0xff]  ;;  %v514_v33 = vld [vmem:[%s1986_s25 + $0x58] sm:$0xff] }
  0x89   : > { %v768_v30 = vadd.f32 %v512_v28, %v256_v27  ;;  %1022 = vst [vmem:[%s2001_s29 + $0x38] sm:$0xff] %v766_v25  ;;  %1023 = vst [vmem:[%s2001_s29 + $0x40] sm:$0xff] %v767_v26  ;;  %v769_v34 = vadd.f32 %v513_v31, %v257_v29  ;;  %v770_v35 = vadd.f32 %v514_v33, %v258_v32  ;;  %v259_v36 = vld [vmem:[%s1979_s3 + $0x60] sm:$0xff]  ;;  %v260_v38 = vld [vmem:[%s1979_s3 + $0x68] sm:$0xff] }
  0x8a   : > { %v515_v37 = vld [vmem:[%s1986_s25 + $0x60] sm:$0xff]  ;;  %v516_v40 = vld [vmem:[%s1986_s25 + $0x68] sm:$0xff]  ;;  %v261_v41 = vld [vmem:[%s1979_s3 + $0x70] sm:$0xff] }
  0x8b   : > { %1024 = vst [vmem:[%s2001_s29 + $0x48] sm:$0xff] %v768_v30  ;;  %v771_v39 = vadd.f32 %v515_v37, %v259_v36  ;;  %v517_v42 = vld [vmem:[%s1986_s25 + $0x70] sm:$0xff]  ;;  %1025 = vst [vmem:[%s2001_s29 + $0x50] sm:$0xff] %v769_v34  ;;  %v772_v43 = vadd.f32 %v516_v40, %v260_v38  ;;  %v262_v45 = vld [vmem:[%s1979_s3 + $0x78] sm:$0xff] }
  0x8c   : > { %1026 = vst [vmem:[%s2001_s29 + $0x58] sm:$0xff] %v770_v35  ;;  %v773_v44 = vadd.f32 %v517_v42, %v261_v41  ;;  %v518_v46 = vld [vmem:[%s1986_s25 + $0x78] sm:$0xff]  ;;  %v263_v47 = vld [vmem:[%s1979_s3 + $0x80] sm:$0xff]  ;;  %v264_v50 = vld [vmem:[%s1979_s3 + $0x88] sm:$0xff] }
  0x8d   : > { %1027 = vst [vmem:[%s2001_s29 + $0x60] sm:$0xff] %v771_v39  ;;  %v774_v48 = vadd.f32 %v518_v46, %v262_v45  ;;  %v519_v49 = vld [vmem:[%s1986_s25 + $0x80] sm:$0xff]  ;;  %v520_v51 = vld [vmem:[%s1986_s25 + $0x88] sm:$0xff]  ;;  %1028 = vst [vmem:[%s2001_s29 + $0x68] sm:$0xff] %v772_v43 }
  0x8e   : > { %1029 = vst [vmem:[%s2001_s29 + $0x70] sm:$0xff] %v773_v44  ;;  %v775_v52 = vadd.f32 %v519_v49, %v263_v47  ;;  %v776_v53 = vadd.f32 %v520_v51, %v264_v50  ;;  %v265_v54 = vld [vmem:[%s1979_s3 + $0x90] sm:$0xff]  ;;  %v266_v56 = vld [vmem:[%s1979_s3 + $0x98] sm:$0xff]  ;;  %v267_v59 = vld [vmem:[%s1979_s3 + $0xa0] sm:$0xff] }
  0x8f   : > { %v521_v55 = vld [vmem:[%s1986_s25 + $0x90] sm:$0xff]  ;;  %1030 = vst [vmem:[%s2001_s29 + $0x78] sm:$0xff] %v774_v48  ;;  %v522_v58 = vld [vmem:[%s1986_s25 + $0x98] sm:$0xff]  ;;  %v523_v60 = vld [vmem:[%s1986_s25 + $0xa0] sm:$0xff] }
  0x90   : > { %v777_v57 = vadd.f32 %v521_v55, %v265_v54  ;;  %1031 = vst [vmem:[%s2001_s29 + $0x80] sm:$0xff] %v775_v52  ;;  %1032 = vst [vmem:[%s2001_s29 + $0x88] sm:$0xff] %v776_v53  ;;  %v778_v61 = vadd.f32 %v522_v58, %v266_v56  ;;  %v779_v62 = vadd.f32 %v523_v60, %v267_v59  ;;  %v268_v63 = vld [vmem:[%s1979_s3 + $0xa8] sm:$0xff]  ;;  %v269_v1 = vld [vmem:[%s1979_s3 + $0xb0] sm:$0xff] }
  0x91   : > { %v524_v0 = vld [vmem:[%s1986_s25 + $0xa8] sm:$0xff]  ;;  %v525_v3 = vld [vmem:[%s1986_s25 + $0xb0] sm:$0xff]  ;;  %v270_v4 = vld [vmem:[%s1979_s3 + $0xb8] sm:$0xff] }
  0x92   : > { %1033 = vst [vmem:[%s2001_s29 + $0x90] sm:$0xff] %v777_v57  ;;  %v780_v2 = vadd.f32 %v524_v0, %v268_v63  ;;  %v526_v5 = vld [vmem:[%s1986_s25 + $0xb8] sm:$0xff]  ;;  %1034 = vst [vmem:[%s2001_s29 + $0x98] sm:$0xff] %v778_v61  ;;  %v781_v6 = vadd.f32 %v525_v3, %v269_v1  ;;  %v271_v8 = vld [vmem:[%s1979_s3 + $0xc0] sm:$0xff] }
  0x93   : > { %1035 = vst [vmem:[%s2001_s29 + $0xa0] sm:$0xff] %v779_v62  ;;  %v782_v7 = vadd.f32 %v526_v5, %v270_v4  ;;  %v527_v9 = vld [vmem:[%s1986_s25 + $0xc0] sm:$0xff]  ;;  %v272_v10 = vld [vmem:[%s1979_s3 + $0xc8] sm:$0xff]  ;;  %v273_v13 = vld [vmem:[%s1979_s3 + $0xd0] sm:$0xff] }
  0x94   : > { %1036 = vst [vmem:[%s2001_s29 + $0xa8] sm:$0xff] %v780_v2  ;;  %v783_v11 = vadd.f32 %v527_v9, %v271_v8  ;;  %v528_v12 = vld [vmem:[%s1986_s25 + $0xc8] sm:$0xff]  ;;  %v529_v14 = vld [vmem:[%s1986_s25 + $0xd0] sm:$0xff]  ;;  %1037 = vst [vmem:[%s2001_s29 + $0xb0] sm:$0xff] %v781_v6 }
  0x95   : > { %1038 = vst [vmem:[%s2001_s29 + $0xb8] sm:$0xff] %v782_v7  ;;  %v784_v15 = vadd.f32 %v528_v12, %v272_v10  ;;  %v785_v16 = vadd.f32 %v529_v14, %v273_v13  ;;  %v274_v17 = vld [vmem:[%s1979_s3 + $0xd8] sm:$0xff]  ;;  %v275_v19 = vld [vmem:[%s1979_s3 + $0xe0] sm:$0xff]  ;;  %v276_v22 = vld [vmem:[%s1979_s3 + $0xe8] sm:$0xff] }
  0x96   : > { %v530_v18 = vld [vmem:[%s1986_s25 + $0xd8] sm:$0xff]  ;;  %1039 = vst [vmem:[%s2001_s29 + $0xc0] sm:$0xff] %v783_v11  ;;  %v531_v21 = vld [vmem:[%s1986_s25 + $0xe0] sm:$0xff]  ;;  %v532_v23 = vld [vmem:[%s1986_s25 + $0xe8] sm:$0xff] }
  0x97   : > { %v786_v20 = vadd.f32 %v530_v18, %v274_v17  ;;  %1040 = vst [vmem:[%s2001_s29 + $0xc8] sm:$0xff] %v784_v15  ;;  %1041 = vst [vmem:[%s2001_s29 + $0xd0] sm:$0xff] %v785_v16  ;;  %v787_v24 = vadd.f32 %v531_v21, %v275_v19  ;;  %v788_v25 = vadd.f32 %v532_v23, %v276_v22  ;;  %v277_v26 = vld [vmem:[%s1979_s3 + $0xf0] sm:$0xff]  ;;  %v278_v28 = vld [vmem:[%s1979_s3 + $0xf8] sm:$0xff] }
  0x98   : > { %v533_v27 = vld [vmem:[%s1986_s25 + $0xf0] sm:$0xff]  ;;  %v534_v30 = vld [vmem:[%s1986_s25 + $0xf8] sm:$0xff]  ;;  %v279_v31 = vld [vmem:[%s1979_s3 + $0x100] sm:$0xff] }
  0x99   : > { %1042 = vst [vmem:[%s2001_s29 + $0xd8] sm:$0xff] %v786_v20  ;;  %v789_v29 = vadd.f32 %v533_v27, %v277_v26  ;;  %v535_v32 = vld [vmem:[%s1986_s25 + $0x100] sm:$0xff]  ;;  %1043 = vst [vmem:[%s2001_s29 + $0xe0] sm:$0xff] %v787_v24  ;;  %v790_v33 = vadd.f32 %v534_v30, %v278_v28  ;;  %v280_v35 = vld [vmem:[%s1979_s3 + $0x108] sm:$0xff] }
  0x9a   : > { %1044 = vst [vmem:[%s2001_s29 + $0xe8] sm:$0xff] %v788_v25  ;;  %v791_v34 = vadd.f32 %v535_v32, %v279_v31  ;;  %v536_v36 = vld [vmem:[%s1986_s25 + $0x108] sm:$0xff]  ;;  %v281_v37 = vld [vmem:[%s1979_s3 + $0x110] sm:$0xff]  ;;  %v282_v40 = vld [vmem:[%s1979_s3 + $0x118] sm:$0xff] }
  0x9b   : > { %1045 = vst [vmem:[%s2001_s29 + $0xf0] sm:$0xff] %v789_v29  ;;  %v792_v38 = vadd.f32 %v536_v36, %v280_v35  ;;  %v537_v39 = vld [vmem:[%s1986_s25 + $0x110] sm:$0xff]  ;;  %v538_v41 = vld [vmem:[%s1986_s25 + $0x118] sm:$0xff]  ;;  %1046 = vst [vmem:[%s2001_s29 + $0xf8] sm:$0xff] %v790_v33 }
  0x9c   : > { %1047 = vst [vmem:[%s2001_s29 + $0x100] sm:$0xff] %v791_v34  ;;  %v793_v42 = vadd.f32 %v537_v39, %v281_v37  ;;  %v794_v43 = vadd.f32 %v538_v41, %v282_v40  ;;  %v283_v44 = vld [vmem:[%s1979_s3 + $0x120] sm:$0xff]  ;;  %v284_v46 = vld [vmem:[%s1979_s3 + $0x128] sm:$0xff]  ;;  %v285_v49 = vld [vmem:[%s1979_s3 + $0x130] sm:$0xff] }
  0x9d   : > { %v539_v45 = vld [vmem:[%s1986_s25 + $0x120] sm:$0xff]  ;;  %1048 = vst [vmem:[%s2001_s29 + $0x108] sm:$0xff] %v792_v38  ;;  %v540_v48 = vld [vmem:[%s1986_s25 + $0x128] sm:$0xff]  ;;  %v541_v50 = vld [vmem:[%s1986_s25 + $0x130] sm:$0xff] }
  0x9e   : > { %v795_v47 = vadd.f32 %v539_v45, %v283_v44  ;;  %1049 = vst [vmem:[%s2001_s29 + $0x110] sm:$0xff] %v793_v42  ;;  %1050 = vst [vmem:[%s2001_s29 + $0x118] sm:$0xff] %v794_v43  ;;  %v796_v51 = vadd.f32 %v540_v48, %v284_v46  ;;  %v797_v52 = vadd.f32 %v541_v50, %v285_v49  ;;  %v286_v53 = vld [vmem:[%s1979_s3 + $0x138] sm:$0xff]  ;;  %v287_v55 = vld [vmem:[%s1979_s3 + $0x140] sm:$0xff] }
  0x9f   : > { %v542_v54 = vld [vmem:[%s1986_s25 + $0x138] sm:$0xff]  ;;  %v543_v57 = vld [vmem:[%s1986_s25 + $0x140] sm:$0xff]  ;;  %v288_v58 = vld [vmem:[%s1979_s3 + $0x148] sm:$0xff] }
  0xa0   : > { %1051 = vst [vmem:[%s2001_s29 + $0x120] sm:$0xff] %v795_v47  ;;  %v798_v56 = vadd.f32 %v542_v54, %v286_v53  ;;  %v544_v59 = vld [vmem:[%s1986_s25 + $0x148] sm:$0xff]  ;;  %1052 = vst [vmem:[%s2001_s29 + $0x128] sm:$0xff] %v796_v51  ;;  %v799_v60 = vadd.f32 %v543_v57, %v287_v55  ;;  %v289_v62 = vld [vmem:[%s1979_s3 + $0x150] sm:$0xff] }
  0xa1   : > { %1053 = vst [vmem:[%s2001_s29 + $0x130] sm:$0xff] %v797_v52  ;;  %v800_v61 = vadd.f32 %v544_v59, %v288_v58  ;;  %v545_v63 = vld [vmem:[%s1986_s25 + $0x150] sm:$0xff]  ;;  %v290_v0 = vld [vmem:[%s1979_s3 + $0x158] sm:$0xff]  ;;  %v291_v3 = vld [vmem:[%s1979_s3 + $0x160] sm:$0xff] }
  0xa2   : > { %1054 = vst [vmem:[%s2001_s29 + $0x138] sm:$0xff] %v798_v56  ;;  %v801_v1 = vadd.f32 %v545_v63, %v289_v62  ;;  %v546_v2 = vld [vmem:[%s1986_s25 + $0x158] sm:$0xff]  ;;  %v547_v4 = vld [vmem:[%s1986_s25 + $0x160] sm:$0xff]  ;;  %1055 = vst [vmem:[%s2001_s29 + $0x140] sm:$0xff] %v799_v60 }
  0xa3   : > { %1056 = vst [vmem:[%s2001_s29 + $0x148] sm:$0xff] %v800_v61  ;;  %v802_v5 = vadd.f32 %v546_v2, %v290_v0  ;;  %v803_v6 = vadd.f32 %v547_v4, %v291_v3  ;;  %v292_v7 = vld [vmem:[%s1979_s3 + $0x168] sm:$0xff]  ;;  %v293_v9 = vld [vmem:[%s1979_s3 + $0x170] sm:$0xff]  ;;  %v294_v12 = vld [vmem:[%s1979_s3 + $0x178] sm:$0xff] }
  0xa4   : > { %v548_v8 = vld [vmem:[%s1986_s25 + $0x168] sm:$0xff]  ;;  %1057 = vst [vmem:[%s2001_s29 + $0x150] sm:$0xff] %v801_v1  ;;  %v549_v11 = vld [vmem:[%s1986_s25 + $0x170] sm:$0xff]  ;;  %v550_v13 = vld [vmem:[%s1986_s25 + $0x178] sm:$0xff] }
  0xa5   : > { %v804_v10 = vadd.f32 %v548_v8, %v292_v7  ;;  %1058 = vst [vmem:[%s2001_s29 + $0x158] sm:$0xff] %v802_v5  ;;  %1059 = vst [vmem:[%s2001_s29 + $0x160] sm:$0xff] %v803_v6  ;;  %v805_v14 = vadd.f32 %v549_v11, %v293_v9  ;;  %v806_v15 = vadd.f32 %v550_v13, %v294_v12  ;;  %v295_v16 = vld [vmem:[%s1979_s3 + $0x180] sm:$0xff]  ;;  %v296_v18 = vld [vmem:[%s1979_s3 + $0x188] sm:$0xff] }
  0xa6   : > { %v551_v17 = vld [vmem:[%s1986_s25 + $0x180] sm:$0xff]  ;;  %v552_v20 = vld [vmem:[%s1986_s25 + $0x188] sm:$0xff]  ;;  %v297_v21 = vld [vmem:[%s1979_s3 + $0x190] sm:$0xff] }
  0xa7   : > { %1060 = vst [vmem:[%s2001_s29 + $0x168] sm:$0xff] %v804_v10  ;;  %v807_v19 = vadd.f32 %v551_v17, %v295_v16  ;;  %v553_v22 = vld [vmem:[%s1986_s25 + $0x190] sm:$0xff]  ;;  %1061 = vst [vmem:[%s2001_s29 + $0x170] sm:$0xff] %v805_v14  ;;  %v808_v23 = vadd.f32 %v552_v20, %v296_v18  ;;  %v298_v25 = vld [vmem:[%s1979_s3 + $0x198] sm:$0xff] }
  0xa8   : > { %1062 = vst [vmem:[%s2001_s29 + $0x178] sm:$0xff] %v806_v15  ;;  %v809_v24 = vadd.f32 %v553_v22, %v297_v21  ;;  %v554_v26 = vld [vmem:[%s1986_s25 + $0x198] sm:$0xff]  ;;  %v299_v27 = vld [vmem:[%s1979_s3 + $0x1a0] sm:$0xff]  ;;  %v300_v30 = vld [vmem:[%s1979_s3 + $0x1a8] sm:$0xff] }
  0xa9   : > { %1063 = vst [vmem:[%s2001_s29 + $0x180] sm:$0xff] %v807_v19  ;;  %v810_v28 = vadd.f32 %v554_v26, %v298_v25  ;;  %v555_v29 = vld [vmem:[%s1986_s25 + $0x1a0] sm:$0xff]  ;;  %v556_v31 = vld [vmem:[%s1986_s25 + $0x1a8] sm:$0xff]  ;;  %1064 = vst [vmem:[%s2001_s29 + $0x188] sm:$0xff] %v808_v23 }
  0xaa   : > { %1065 = vst [vmem:[%s2001_s29 + $0x190] sm:$0xff] %v809_v24  ;;  %v811_v32 = vadd.f32 %v555_v29, %v299_v27  ;;  %v812_v33 = vadd.f32 %v556_v31, %v300_v30  ;;  %v301_v34 = vld [vmem:[%s1979_s3 + $0x1b0] sm:$0xff]  ;;  %v302_v36 = vld [vmem:[%s1979_s3 + $0x1b8] sm:$0xff]  ;;  %v303_v39 = vld [vmem:[%s1979_s3 + $0x1c0] sm:$0xff] }
  0xab   : > { %v557_v35 = vld [vmem:[%s1986_s25 + $0x1b0] sm:$0xff]  ;;  %1066 = vst [vmem:[%s2001_s29 + $0x198] sm:$0xff] %v810_v28  ;;  %v558_v38 = vld [vmem:[%s1986_s25 + $0x1b8] sm:$0xff]  ;;  %v559_v40 = vld [vmem:[%s1986_s25 + $0x1c0] sm:$0xff] }
  0xac   : > { %v813_v37 = vadd.f32 %v557_v35, %v301_v34  ;;  %1067 = vst [vmem:[%s2001_s29 + $0x1a0] sm:$0xff] %v811_v32  ;;  %1068 = vst [vmem:[%s2001_s29 + $0x1a8] sm:$0xff] %v812_v33  ;;  %v814_v41 = vadd.f32 %v558_v38, %v302_v36  ;;  %v815_v42 = vadd.f32 %v559_v40, %v303_v39  ;;  %v304_v43 = vld [vmem:[%s1979_s3 + $0x1c8] sm:$0xff]  ;;  %v305_v45 = vld [vmem:[%s1979_s3 + $0x1d0] sm:$0xff] }
  0xad   : > { %v560_v44 = vld [vmem:[%s1986_s25 + $0x1c8] sm:$0xff]  ;;  %v561_v47 = vld [vmem:[%s1986_s25 + $0x1d0] sm:$0xff]  ;;  %v306_v48 = vld [vmem:[%s1979_s3 + $0x1d8] sm:$0xff] }
  0xae   : > { %1069 = vst [vmem:[%s2001_s29 + $0x1b0] sm:$0xff] %v813_v37  ;;  %v816_v46 = vadd.f32 %v560_v44, %v304_v43  ;;  %v562_v49 = vld [vmem:[%s1986_s25 + $0x1d8] sm:$0xff]  ;;  %1070 = vst [vmem:[%s2001_s29 + $0x1b8] sm:$0xff] %v814_v41  ;;  %v817_v50 = vadd.f32 %v561_v47, %v305_v45  ;;  %v307_v52 = vld [vmem:[%s1979_s3 + $0x1e0] sm:$0xff] }
  0xaf   : > { %1071 = vst [vmem:[%s2001_s29 + $0x1c0] sm:$0xff] %v815_v42  ;;  %v818_v51 = vadd.f32 %v562_v49, %v306_v48  ;;  %v563_v53 = vld [vmem:[%s1986_s25 + $0x1e0] sm:$0xff]  ;;  %v308_v54 = vld [vmem:[%s1979_s3 + $0x1e8] sm:$0xff]  ;;  %v309_v57 = vld [vmem:[%s1979_s3 + $0x1f0] sm:$0xff] }
  0xb0   : > { %1072 = vst [vmem:[%s2001_s29 + $0x1c8] sm:$0xff] %v816_v46  ;;  %v819_v55 = vadd.f32 %v563_v53, %v307_v52  ;;  %v564_v56 = vld [vmem:[%s1986_s25 + $0x1e8] sm:$0xff]  ;;  %v565_v58 = vld [vmem:[%s1986_s25 + $0x1f0] sm:$0xff]  ;;  %1073 = vst [vmem:[%s2001_s29 + $0x1d0] sm:$0xff] %v817_v50 }
  0xb1   : > { %1074 = vst [vmem:[%s2001_s29 + $0x1d8] sm:$0xff] %v818_v51  ;;  %v820_v59 = vadd.f32 %v564_v56, %v308_v54  ;;  %v821_v60 = vadd.f32 %v565_v58, %v309_v57  ;;  %v310_v61 = vld [vmem:[%s1979_s3 + $0x1f8] sm:$0xff]  ;;  %v311_v63 = vld [vmem:[%s1979_s3 + $0x200] sm:$0xff]  ;;  %v312_v2 = vld [vmem:[%s1979_s3 + $0x208] sm:$0xff] }
  0xb2   : > { %v566_v62 = vld [vmem:[%s1986_s25 + $0x1f8] sm:$0xff]  ;;  %1075 = vst [vmem:[%s2001_s29 + $0x1e0] sm:$0xff] %v819_v55  ;;  %v567_v1 = vld [vmem:[%s1986_s25 + $0x200] sm:$0xff]  ;;  %v568_v3 = vld [vmem:[%s1986_s25 + $0x208] sm:$0xff] }
  0xb3   : > { %v822_v0 = vadd.f32 %v566_v62, %v310_v61  ;;  %1076 = vst [vmem:[%s2001_s29 + $0x1e8] sm:$0xff] %v820_v59  ;;  %1077 = vst [vmem:[%s2001_s29 + $0x1f0] sm:$0xff] %v821_v60  ;;  %v823_v4 = vadd.f32 %v567_v1, %v311_v63  ;;  %v824_v5 = vadd.f32 %v568_v3, %v312_v2  ;;  %v313_v6 = vld [vmem:[%s1979_s3 + $0x210] sm:$0xff]  ;;  %v314_v8 = vld [vmem:[%s1979_s3 + $0x218] sm:$0xff] }
  0xb4   : > { %v569_v7 = vld [vmem:[%s1986_s25 + $0x210] sm:$0xff]  ;;  %v570_v10 = vld [vmem:[%s1986_s25 + $0x218] sm:$0xff]  ;;  %v315_v11 = vld [vmem:[%s1979_s3 + $0x220] sm:$0xff] }
  0xb5   : > { %1078 = vst [vmem:[%s2001_s29 + $0x1f8] sm:$0xff] %v822_v0  ;;  %v825_v9 = vadd.f32 %v569_v7, %v313_v6  ;;  %v571_v12 = vld [vmem:[%s1986_s25 + $0x220] sm:$0xff]  ;;  %1079 = vst [vmem:[%s2001_s29 + $0x200] sm:$0xff] %v823_v4  ;;  %v826_v13 = vadd.f32 %v570_v10, %v314_v8  ;;  %v316_v15 = vld [vmem:[%s1979_s3 + $0x228] sm:$0xff] }
  0xb6   : > { %1080 = vst [vmem:[%s2001_s29 + $0x208] sm:$0xff] %v824_v5  ;;  %v827_v14 = vadd.f32 %v571_v12, %v315_v11  ;;  %v572_v16 = vld [vmem:[%s1986_s25 + $0x228] sm:$0xff]  ;;  %v317_v17 = vld [vmem:[%s1979_s3 + $0x230] sm:$0xff]  ;;  %v318_v20 = vld [vmem:[%s1979_s3 + $0x238] sm:$0xff] }
  0xb7   : > { %1081 = vst [vmem:[%s2001_s29 + $0x210] sm:$0xff] %v825_v9  ;;  %v828_v18 = vadd.f32 %v572_v16, %v316_v15  ;;  %v573_v19 = vld [vmem:[%s1986_s25 + $0x230] sm:$0xff]  ;;  %v574_v21 = vld [vmem:[%s1986_s25 + $0x238] sm:$0xff]  ;;  %1082 = vst [vmem:[%s2001_s29 + $0x218] sm:$0xff] %v826_v13 }
  0xb8   : > { %1083 = vst [vmem:[%s2001_s29 + $0x220] sm:$0xff] %v827_v14  ;;  %v829_v22 = vadd.f32 %v573_v19, %v317_v17  ;;  %v830_v23 = vadd.f32 %v574_v21, %v318_v20  ;;  %v319_v24 = vld [vmem:[%s1979_s3 + $0x240] sm:$0xff]  ;;  %v320_v26 = vld [vmem:[%s1979_s3 + $0x248] sm:$0xff]  ;;  %v321_v29 = vld [vmem:[%s1979_s3 + $0x250] sm:$0xff] }
  0xb9   : > { %v575_v25 = vld [vmem:[%s1986_s25 + $0x240] sm:$0xff]  ;;  %1084 = vst [vmem:[%s2001_s29 + $0x228] sm:$0xff] %v828_v18  ;;  %v576_v28 = vld [vmem:[%s1986_s25 + $0x248] sm:$0xff]  ;;  %v577_v30 = vld [vmem:[%s1986_s25 + $0x250] sm:$0xff] }
  0xba   : > { %v831_v27 = vadd.f32 %v575_v25, %v319_v24  ;;  %1085 = vst [vmem:[%s2001_s29 + $0x230] sm:$0xff] %v829_v22  ;;  %1086 = vst [vmem:[%s2001_s29 + $0x238] sm:$0xff] %v830_v23  ;;  %v832_v31 = vadd.f32 %v576_v28, %v320_v26  ;;  %v833_v32 = vadd.f32 %v577_v30, %v321_v29  ;;  %v322_v33 = vld [vmem:[%s1979_s3 + $0x258] sm:$0xff]  ;;  %v323_v35 = vld [vmem:[%s1979_s3 + $0x260] sm:$0xff] }
  0xbb   : > { %v578_v34 = vld [vmem:[%s1986_s25 + $0x258] sm:$0xff]  ;;  %v579_v37 = vld [vmem:[%s1986_s25 + $0x260] sm:$0xff]  ;;  %v324_v38 = vld [vmem:[%s1979_s3 + $0x268] sm:$0xff] }
  0xbc   : > { %1087 = vst [vmem:[%s2001_s29 + $0x240] sm:$0xff] %v831_v27  ;;  %v834_v36 = vadd.f32 %v578_v34, %v322_v33  ;;  %v580_v39 = vld [vmem:[%s1986_s25 + $0x268] sm:$0xff]  ;;  %1088 = vst [vmem:[%s2001_s29 + $0x248] sm:$0xff] %v832_v31  ;;  %v835_v40 = vadd.f32 %v579_v37, %v323_v35  ;;  %v325_v42 = vld [vmem:[%s1979_s3 + $0x270] sm:$0xff] }
  0xbd   : > { %1089 = vst [vmem:[%s2001_s29 + $0x250] sm:$0xff] %v833_v32  ;;  %v836_v41 = vadd.f32 %v580_v39, %v324_v38  ;;  %v581_v43 = vld [vmem:[%s1986_s25 + $0x270] sm:$0xff]  ;;  %v326_v44 = vld [vmem:[%s1979_s3 + $0x278] sm:$0xff]  ;;  %v327_v47 = vld [vmem:[%s1979_s3 + $0x280] sm:$0xff] }
  0xbe   : > { %1090 = vst [vmem:[%s2001_s29 + $0x258] sm:$0xff] %v834_v36  ;;  %v837_v45 = vadd.f32 %v581_v43, %v325_v42  ;;  %v582_v46 = vld [vmem:[%s1986_s25 + $0x278] sm:$0xff]  ;;  %v583_v48 = vld [vmem:[%s1986_s25 + $0x280] sm:$0xff]  ;;  %1091 = vst [vmem:[%s2001_s29 + $0x260] sm:$0xff] %v835_v40 }
  0xbf   : > { %1092 = vst [vmem:[%s2001_s29 + $0x268] sm:$0xff] %v836_v41  ;;  %v838_v49 = vadd.f32 %v582_v46, %v326_v44  ;;  %v839_v50 = vadd.f32 %v583_v48, %v327_v47  ;;  %v328_v51 = vld [vmem:[%s1979_s3 + $0x288] sm:$0xff]  ;;  %v329_v53 = vld [vmem:[%s1979_s3 + $0x290] sm:$0xff]  ;;  %v330_v56 = vld [vmem:[%s1979_s3 + $0x298] sm:$0xff] }
  0xc0   : > { %v584_v52 = vld [vmem:[%s1986_s25 + $0x288] sm:$0xff]  ;;  %1093 = vst [vmem:[%s2001_s29 + $0x270] sm:$0xff] %v837_v45  ;;  %v585_v55 = vld [vmem:[%s1986_s25 + $0x290] sm:$0xff]  ;;  %v586_v57 = vld [vmem:[%s1986_s25 + $0x298] sm:$0xff] }
  0xc1   : > { %v840_v54 = vadd.f32 %v584_v52, %v328_v51  ;;  %1094 = vst [vmem:[%s2001_s29 + $0x278] sm:$0xff] %v838_v49  ;;  %1095 = vst [vmem:[%s2001_s29 + $0x280] sm:$0xff] %v839_v50  ;;  %v841_v58 = vadd.f32 %v585_v55, %v329_v53  ;;  %v842_v59 = vadd.f32 %v586_v57, %v330_v56  ;;  %v331_v60 = vld [vmem:[%s1979_s3 + $0x2a0] sm:$0xff]  ;;  %v332_v62 = vld [vmem:[%s1979_s3 + $0x2a8] sm:$0xff] }
  0xc2   : > { %v587_v61 = vld [vmem:[%s1986_s25 + $0x2a0] sm:$0xff]  ;;  %v588_v0 = vld [vmem:[%s1986_s25 + $0x2a8] sm:$0xff]  ;;  %v333_v1 = vld [vmem:[%s1979_s3 + $0x2b0] sm:$0xff] }
  0xc3   : > { %1096 = vst [vmem:[%s2001_s29 + $0x288] sm:$0xff] %v840_v54  ;;  %v843_v63 = vadd.f32 %v587_v61, %v331_v60  ;;  %v589_v2 = vld [vmem:[%s1986_s25 + $0x2b0] sm:$0xff]  ;;  %1097 = vst [vmem:[%s2001_s29 + $0x290] sm:$0xff] %v841_v58  ;;  %v844_v3 = vadd.f32 %v588_v0, %v332_v62  ;;  %v334_v5 = vld [vmem:[%s1979_s3 + $0x2b8] sm:$0xff] }
  0xc4   : > { %1098 = vst [vmem:[%s2001_s29 + $0x298] sm:$0xff] %v842_v59  ;;  %v845_v4 = vadd.f32 %v589_v2, %v333_v1  ;;  %v590_v6 = vld [vmem:[%s1986_s25 + $0x2b8] sm:$0xff]  ;;  %v335_v7 = vld [vmem:[%s1979_s3 + $0x2c0] sm:$0xff]  ;;  %v336_v10 = vld [vmem:[%s1979_s3 + $0x2c8] sm:$0xff] }
  0xc5   : > { %1099 = vst [vmem:[%s2001_s29 + $0x2a0] sm:$0xff] %v843_v63  ;;  %v846_v8 = vadd.f32 %v590_v6, %v334_v5  ;;  %v591_v9 = vld [vmem:[%s1986_s25 + $0x2c0] sm:$0xff]  ;;  %v592_v11 = vld [vmem:[%s1986_s25 + $0x2c8] sm:$0xff]  ;;  %1100 = vst [vmem:[%s2001_s29 + $0x2a8] sm:$0xff] %v844_v3 }
  0xc6   : > { %1101 = vst [vmem:[%s2001_s29 + $0x2b0] sm:$0xff] %v845_v4  ;;  %v847_v12 = vadd.f32 %v591_v9, %v335_v7  ;;  %v848_v13 = vadd.f32 %v592_v11, %v336_v10  ;;  %v337_v14 = vld [vmem:[%s1979_s3 + $0x2d0] sm:$0xff]  ;;  %v338_v16 = vld [vmem:[%s1979_s3 + $0x2d8] sm:$0xff]  ;;  %v339_v19 = vld [vmem:[%s1979_s3 + $0x2e0] sm:$0xff] }
  0xc7   : > { %v593_v15 = vld [vmem:[%s1986_s25 + $0x2d0] sm:$0xff]  ;;  %1102 = vst [vmem:[%s2001_s29 + $0x2b8] sm:$0xff] %v846_v8  ;;  %v594_v18 = vld [vmem:[%s1986_s25 + $0x2d8] sm:$0xff]  ;;  %v595_v20 = vld [vmem:[%s1986_s25 + $0x2e0] sm:$0xff] }
  0xc8   : > { %v849_v17 = vadd.f32 %v593_v15, %v337_v14  ;;  %1103 = vst [vmem:[%s2001_s29 + $0x2c0] sm:$0xff] %v847_v12  ;;  %1104 = vst [vmem:[%s2001_s29 + $0x2c8] sm:$0xff] %v848_v13  ;;  %v850_v21 = vadd.f32 %v594_v18, %v338_v16  ;;  %v851_v22 = vadd.f32 %v595_v20, %v339_v19  ;;  %v340_v23 = vld [vmem:[%s1979_s3 + $0x2e8] sm:$0xff]  ;;  %v341_v25 = vld [vmem:[%s1979_s3 + $0x2f0] sm:$0xff] }
  0xc9   : > { %v596_v24 = vld [vmem:[%s1986_s25 + $0x2e8] sm:$0xff]  ;;  %v597_v27 = vld [vmem:[%s1986_s25 + $0x2f0] sm:$0xff]  ;;  %v342_v28 = vld [vmem:[%s1979_s3 + $0x2f8] sm:$0xff] }
  0xca   : > { %1105 = vst [vmem:[%s2001_s29 + $0x2d0] sm:$0xff] %v849_v17  ;;  %v852_v26 = vadd.f32 %v596_v24, %v340_v23  ;;  %v598_v29 = vld [vmem:[%s1986_s25 + $0x2f8] sm:$0xff]  ;;  %1106 = vst [vmem:[%s2001_s29 + $0x2d8] sm:$0xff] %v850_v21  ;;  %v853_v30 = vadd.f32 %v597_v27, %v341_v25  ;;  %v343_v32 = vld [vmem:[%s1979_s3 + $0x300] sm:$0xff] }
  0xcb   : > { %1107 = vst [vmem:[%s2001_s29 + $0x2e0] sm:$0xff] %v851_v22  ;;  %v854_v31 = vadd.f32 %v598_v29, %v342_v28  ;;  %v599_v33 = vld [vmem:[%s1986_s25 + $0x300] sm:$0xff]  ;;  %v344_v34 = vld [vmem:[%s1979_s3 + $0x308] sm:$0xff]  ;;  %v345_v37 = vld [vmem:[%s1979_s3 + $0x310] sm:$0xff] }
  0xcc   : > { %1108 = vst [vmem:[%s2001_s29 + $0x2e8] sm:$0xff] %v852_v26  ;;  %v855_v35 = vadd.f32 %v599_v33, %v343_v32  ;;  %v600_v36 = vld [vmem:[%s1986_s25 + $0x308] sm:$0xff]  ;;  %v601_v38 = vld [vmem:[%s1986_s25 + $0x310] sm:$0xff]  ;;  %1109 = vst [vmem:[%s2001_s29 + $0x2f0] sm:$0xff] %v853_v30 }
  0xcd   : > { %1110 = vst [vmem:[%s2001_s29 + $0x2f8] sm:$0xff] %v854_v31  ;;  %v856_v39 = vadd.f32 %v600_v36, %v344_v34  ;;  %v857_v40 = vadd.f32 %v601_v38, %v345_v37  ;;  %v346_v41 = vld [vmem:[%s1979_s3 + $0x318] sm:$0xff]  ;;  %v347_v43 = vld [vmem:[%s1979_s3 + $0x320] sm:$0xff]  ;;  %v348_v46 = vld [vmem:[%s1979_s3 + $0x328] sm:$0xff] }
  0xce   : > { %v602_v42 = vld [vmem:[%s1986_s25 + $0x318] sm:$0xff]  ;;  %1111 = vst [vmem:[%s2001_s29 + $0x300] sm:$0xff] %v855_v35  ;;  %v603_v45 = vld [vmem:[%s1986_s25 + $0x320] sm:$0xff]  ;;  %v604_v47 = vld [vmem:[%s1986_s25 + $0x328] sm:$0xff] }
  0xcf   : > { %v858_v44 = vadd.f32 %v602_v42, %v346_v41  ;;  %1112 = vst [vmem:[%s2001_s29 + $0x308] sm:$0xff] %v856_v39  ;;  %1113 = vst [vmem:[%s2001_s29 + $0x310] sm:$0xff] %v857_v40  ;;  %v859_v48 = vadd.f32 %v603_v45, %v347_v43  ;;  %v860_v49 = vadd.f32 %v604_v47, %v348_v46  ;;  %v349_v50 = vld [vmem:[%s1979_s3 + $0x330] sm:$0xff]  ;;  %v350_v52 = vld [vmem:[%s1979_s3 + $0x338] sm:$0xff] }
  0xd0   : > { %v605_v51 = vld [vmem:[%s1986_s25 + $0x330] sm:$0xff]  ;;  %v606_v54 = vld [vmem:[%s1986_s25 + $0x338] sm:$0xff]  ;;  %v351_v55 = vld [vmem:[%s1979_s3 + $0x340] sm:$0xff] }
  0xd1   : > { %1114 = vst [vmem:[%s2001_s29 + $0x318] sm:$0xff] %v858_v44  ;;  %v861_v53 = vadd.f32 %v605_v51, %v349_v50  ;;  %v607_v56 = vld [vmem:[%s1986_s25 + $0x340] sm:$0xff]  ;;  %1115 = vst [vmem:[%s2001_s29 + $0x320] sm:$0xff] %v859_v48  ;;  %v862_v57 = vadd.f32 %v606_v54, %v350_v52  ;;  %v352_v59 = vld [vmem:[%s1979_s3 + $0x348] sm:$0xff] }
  0xd2   : > { %1116 = vst [vmem:[%s2001_s29 + $0x328] sm:$0xff] %v860_v49  ;;  %v863_v58 = vadd.f32 %v607_v56, %v351_v55  ;;  %v608_v60 = vld [vmem:[%s1986_s25 + $0x348] sm:$0xff]  ;;  %v353_v61 = vld [vmem:[%s1979_s3 + $0x350] sm:$0xff]  ;;  %v354_v0 = vld [vmem:[%s1979_s3 + $0x358] sm:$0xff] }
  0xd3   : > { %1117 = vst [vmem:[%s2001_s29 + $0x330] sm:$0xff] %v861_v53  ;;  %v864_v62 = vadd.f32 %v608_v60, %v352_v59  ;;  %v609_v63 = vld [vmem:[%s1986_s25 + $0x350] sm:$0xff]  ;;  %v610_v1 = vld [vmem:[%s1986_s25 + $0x358] sm:$0xff]  ;;  %1118 = vst [vmem:[%s2001_s29 + $0x338] sm:$0xff] %v862_v57 }
  0xd4   : > { %1119 = vst [vmem:[%s2001_s29 + $0x340] sm:$0xff] %v863_v58  ;;  %v865_v2 = vadd.f32 %v609_v63, %v353_v61  ;;  %v866_v3 = vadd.f32 %v610_v1, %v354_v0  ;;  %v355_v4 = vld [vmem:[%s1979_s3 + $0x360] sm:$0xff]  ;;  %v356_v6 = vld [vmem:[%s1979_s3 + $0x368] sm:$0xff]  ;;  %v357_v9 = vld [vmem:[%s1979_s3 + $0x370] sm:$0xff] }
  0xd5   : > { %v611_v5 = vld [vmem:[%s1986_s25 + $0x360] sm:$0xff]  ;;  %1120 = vst [vmem:[%s2001_s29 + $0x348] sm:$0xff] %v864_v62  ;;  %v612_v8 = vld [vmem:[%s1986_s25 + $0x368] sm:$0xff]  ;;  %v613_v10 = vld [vmem:[%s1986_s25 + $0x370] sm:$0xff] }
  0xd6   : > { %v867_v7 = vadd.f32 %v611_v5, %v355_v4  ;;  %1121 = vst [vmem:[%s2001_s29 + $0x350] sm:$0xff] %v865_v2  ;;  %1122 = vst [vmem:[%s2001_s29 + $0x358] sm:$0xff] %v866_v3  ;;  %v868_v11 = vadd.f32 %v612_v8, %v356_v6  ;;  %v869_v12 = vadd.f32 %v613_v10, %v357_v9  ;;  %v358_v13 = vld [vmem:[%s1979_s3 + $0x378] sm:$0xff]  ;;  %v359_v15 = vld [vmem:[%s1979_s3 + $0x380] sm:$0xff] }
  0xd7   : > { %v614_v14 = vld [vmem:[%s1986_s25 + $0x378] sm:$0xff]  ;;  %v615_v17 = vld [vmem:[%s1986_s25 + $0x380] sm:$0xff]  ;;  %v360_v18 = vld [vmem:[%s1979_s3 + $0x388] sm:$0xff] }
  0xd8   : > { %1123 = vst [vmem:[%s2001_s29 + $0x360] sm:$0xff] %v867_v7  ;;  %v870_v16 = vadd.f32 %v614_v14, %v358_v13  ;;  %v616_v19 = vld [vmem:[%s1986_s25 + $0x388] sm:$0xff]  ;;  %1124 = vst [vmem:[%s2001_s29 + $0x368] sm:$0xff] %v868_v11  ;;  %v871_v20 = vadd.f32 %v615_v17, %v359_v15  ;;  %v361_v22 = vld [vmem:[%s1979_s3 + $0x390] sm:$0xff] }
  0xd9   : > { %1125 = vst [vmem:[%s2001_s29 + $0x370] sm:$0xff] %v869_v12  ;;  %v872_v21 = vadd.f32 %v616_v19, %v360_v18  ;;  %v617_v23 = vld [vmem:[%s1986_s25 + $0x390] sm:$0xff]  ;;  %v362_v24 = vld [vmem:[%s1979_s3 + $0x398] sm:$0xff]  ;;  %v363_v27 = vld [vmem:[%s1979_s3 + $0x3a0] sm:$0xff] }
  0xda   : > { %1126 = vst [vmem:[%s2001_s29 + $0x378] sm:$0xff] %v870_v16  ;;  %v873_v25 = vadd.f32 %v617_v23, %v361_v22  ;;  %v618_v26 = vld [vmem:[%s1986_s25 + $0x398] sm:$0xff]  ;;  %v619_v28 = vld [vmem:[%s1986_s25 + $0x3a0] sm:$0xff]  ;;  %1127 = vst [vmem:[%s2001_s29 + $0x380] sm:$0xff] %v871_v20 }
  0xdb   : > { %1128 = vst [vmem:[%s2001_s29 + $0x388] sm:$0xff] %v872_v21  ;;  %v874_v29 = vadd.f32 %v618_v26, %v362_v24  ;;  %v875_v30 = vadd.f32 %v619_v28, %v363_v27  ;;  %v364_v31 = vld [vmem:[%s1979_s3 + $0x3a8] sm:$0xff]  ;;  %v365_v33 = vld [vmem:[%s1979_s3 + $0x3b0] sm:$0xff]  ;;  %v366_v36 = vld [vmem:[%s1979_s3 + $0x3b8] sm:$0xff] }
  0xdc   : > { %v620_v32 = vld [vmem:[%s1986_s25 + $0x3a8] sm:$0xff]  ;;  %1129 = vst [vmem:[%s2001_s29 + $0x390] sm:$0xff] %v873_v25  ;;  %v621_v35 = vld [vmem:[%s1986_s25 + $0x3b0] sm:$0xff]  ;;  %v622_v37 = vld [vmem:[%s1986_s25 + $0x3b8] sm:$0xff] }
  0xdd   : > { %v876_v34 = vadd.f32 %v620_v32, %v364_v31  ;;  %1130 = vst [vmem:[%s2001_s29 + $0x398] sm:$0xff] %v874_v29  ;;  %1131 = vst [vmem:[%s2001_s29 + $0x3a0] sm:$0xff] %v875_v30  ;;  %v877_v38 = vadd.f32 %v621_v35, %v365_v33  ;;  %v878_v39 = vadd.f32 %v622_v37, %v366_v36  ;;  %v367_v40 = vld [vmem:[%s1979_s3 + $0x3c0] sm:$0xff]  ;;  %v368_v42 = vld [vmem:[%s1979_s3 + $0x3c8] sm:$0xff] }
  0xde   : > { %v623_v41 = vld [vmem:[%s1986_s25 + $0x3c0] sm:$0xff]  ;;  %v624_v44 = vld [vmem:[%s1986_s25 + $0x3c8] sm:$0xff]  ;;  %v369_v45 = vld [vmem:[%s1979_s3 + $0x3d0] sm:$0xff] }
  0xdf   : > { %1132 = vst [vmem:[%s2001_s29 + $0x3a8] sm:$0xff] %v876_v34  ;;  %v879_v43 = vadd.f32 %v623_v41, %v367_v40  ;;  %v625_v46 = vld [vmem:[%s1986_s25 + $0x3d0] sm:$0xff]  ;;  %1133 = vst [vmem:[%s2001_s29 + $0x3b0] sm:$0xff] %v877_v38  ;;  %v880_v47 = vadd.f32 %v624_v44, %v368_v42  ;;  %v370_v49 = vld [vmem:[%s1979_s3 + $0x3d8] sm:$0xff] }
  0xe0   : > { %1134 = vst [vmem:[%s2001_s29 + $0x3b8] sm:$0xff] %v878_v39  ;;  %v881_v48 = vadd.f32 %v625_v46, %v369_v45  ;;  %v626_v50 = vld [vmem:[%s1986_s25 + $0x3d8] sm:$0xff]  ;;  %v371_v51 = vld [vmem:[%s1979_s3 + $0x3e0] sm:$0xff]  ;;  %v372_v54 = vld [vmem:[%s1979_s3 + $0x3e8] sm:$0xff] }
  0xe1   : > { %1135 = vst [vmem:[%s2001_s29 + $0x3c0] sm:$0xff] %v879_v43  ;;  %v882_v52 = vadd.f32 %v626_v50, %v370_v49  ;;  %v627_v53 = vld [vmem:[%s1986_s25 + $0x3e0] sm:$0xff]  ;;  %v628_v55 = vld [vmem:[%s1986_s25 + $0x3e8] sm:$0xff]  ;;  %1136 = vst [vmem:[%s2001_s29 + $0x3c8] sm:$0xff] %v880_v47 }
  0xe2   : > { %1137 = vst [vmem:[%s2001_s29 + $0x3d0] sm:$0xff] %v881_v48  ;;  %v883_v56 = vadd.f32 %v627_v53, %v371_v51  ;;  %v884_v57 = vadd.f32 %v628_v55, %v372_v54  ;;  %v373_v58 = vld [vmem:[%s1979_s3 + $0x3f0] sm:$0xff]  ;;  %v374_v60 = vld [vmem:[%s1979_s3 + $0x3f8] sm:$0xff]  ;;  %v375_v63 = vld [vmem:[%s1979_s3 + $0x400] sm:$0xff] }
  0xe3   : > { %v629_v59 = vld [vmem:[%s1986_s25 + $0x3f0] sm:$0xff]  ;;  %1138 = vst [vmem:[%s2001_s29 + $0x3d8] sm:$0xff] %v882_v52  ;;  %v630_v62 = vld [vmem:[%s1986_s25 + $0x3f8] sm:$0xff]  ;;  %v631_v0 = vld [vmem:[%s1986_s25 + $0x400] sm:$0xff] }
  0xe4   : > { %v885_v61 = vadd.f32 %v629_v59, %v373_v58  ;;  %1139 = vst [vmem:[%s2001_s29 + $0x3e0] sm:$0xff] %v883_v56  ;;  %1140 = vst [vmem:[%s2001_s29 + $0x3e8] sm:$0xff] %v884_v57  ;;  %v886_v1 = vadd.f32 %v630_v62, %v374_v60  ;;  %v887_v2 = vadd.f32 %v631_v0, %v375_v63  ;;  %v376_v3 = vld [vmem:[%s1979_s3 + $0x408] sm:$0xff]  ;;  %v377_v5 = vld [vmem:[%s1979_s3 + $0x410] sm:$0xff] }
  0xe5   : > { %v632_v4 = vld [vmem:[%s1986_s25 + $0x408] sm:$0xff]  ;;  %v633_v7 = vld [vmem:[%s1986_s25 + $0x410] sm:$0xff]  ;;  %v378_v8 = vld [vmem:[%s1979_s3 + $0x418] sm:$0xff] }
  0xe6   : > { %1141 = vst [vmem:[%s2001_s29 + $0x3f0] sm:$0xff] %v885_v61  ;;  %v888_v6 = vadd.f32 %v632_v4, %v376_v3  ;;  %v634_v9 = vld [vmem:[%s1986_s25 + $0x418] sm:$0xff]  ;;  %1142 = vst [vmem:[%s2001_s29 + $0x3f8] sm:$0xff] %v886_v1  ;;  %v889_v10 = vadd.f32 %v633_v7, %v377_v5  ;;  %v379_v12 = vld [vmem:[%s1979_s3 + $0x420] sm:$0xff] }
  0xe7   : > { %1143 = vst [vmem:[%s2001_s29 + $0x400] sm:$0xff] %v887_v2  ;;  %v890_v11 = vadd.f32 %v634_v9, %v378_v8  ;;  %v635_v13 = vld [vmem:[%s1986_s25 + $0x420] sm:$0xff]  ;;  %v380_v14 = vld [vmem:[%s1979_s3 + $0x428] sm:$0xff]  ;;  %v381_v17 = vld [vmem:[%s1979_s3 + $0x430] sm:$0xff] }
  0xe8   : > { %1144 = vst [vmem:[%s2001_s29 + $0x408] sm:$0xff] %v888_v6  ;;  %v891_v15 = vadd.f32 %v635_v13, %v379_v12  ;;  %v636_v16 = vld [vmem:[%s1986_s25 + $0x428] sm:$0xff]  ;;  %v637_v18 = vld [vmem:[%s1986_s25 + $0x430] sm:$0xff]  ;;  %1145 = vst [vmem:[%s2001_s29 + $0x410] sm:$0xff] %v889_v10 }
  0xe9   : > { %1146 = vst [vmem:[%s2001_s29 + $0x418] sm:$0xff] %v890_v11  ;;  %v892_v19 = vadd.f32 %v636_v16, %v380_v14  ;;  %v893_v20 = vadd.f32 %v637_v18, %v381_v17  ;;  %v382_v21 = vld [vmem:[%s1979_s3 + $0x438] sm:$0xff]  ;;  %v383_v23 = vld [vmem:[%s1979_s3 + $0x440] sm:$0xff]  ;;  %v384_v26 = vld [vmem:[%s1979_s3 + $0x448] sm:$0xff] }
  0xea   : > { %v638_v22 = vld [vmem:[%s1986_s25 + $0x438] sm:$0xff]  ;;  %1147 = vst [vmem:[%s2001_s29 + $0x420] sm:$0xff] %v891_v15  ;;  %v639_v25 = vld [vmem:[%s1986_s25 + $0x440] sm:$0xff]  ;;  %v640_v27 = vld [vmem:[%s1986_s25 + $0x448] sm:$0xff] }
  0xeb   : > { %v894_v24 = vadd.f32 %v638_v22, %v382_v21  ;;  %1148 = vst [vmem:[%s2001_s29 + $0x428] sm:$0xff] %v892_v19  ;;  %1149 = vst [vmem:[%s2001_s29 + $0x430] sm:$0xff] %v893_v20  ;;  %v895_v28 = vadd.f32 %v639_v25, %v383_v23  ;;  %v896_v29 = vadd.f32 %v640_v27, %v384_v26  ;;  %v385_v30 = vld [vmem:[%s1979_s3 + $0x450] sm:$0xff]  ;;  %v386_v32 = vld [vmem:[%s1979_s3 + $0x458] sm:$0xff] }
  0xec   : > { %v641_v31 = vld [vmem:[%s1986_s25 + $0x450] sm:$0xff]  ;;  %v642_v34 = vld [vmem:[%s1986_s25 + $0x458] sm:$0xff]  ;;  %v387_v35 = vld [vmem:[%s1979_s3 + $0x460] sm:$0xff] }
  0xed   : > { %1150 = vst [vmem:[%s2001_s29 + $0x438] sm:$0xff] %v894_v24  ;;  %v897_v33 = vadd.f32 %v641_v31, %v385_v30  ;;  %v643_v36 = vld [vmem:[%s1986_s25 + $0x460] sm:$0xff]  ;;  %1151 = vst [vmem:[%s2001_s29 + $0x440] sm:$0xff] %v895_v28  ;;  %v898_v37 = vadd.f32 %v642_v34, %v386_v32  ;;  %v388_v39 = vld [vmem:[%s1979_s3 + $0x468] sm:$0xff] }
  0xee   : > { %1152 = vst [vmem:[%s2001_s29 + $0x448] sm:$0xff] %v896_v29  ;;  %v899_v38 = vadd.f32 %v643_v36, %v387_v35  ;;  %v644_v40 = vld [vmem:[%s1986_s25 + $0x468] sm:$0xff]  ;;  %v389_v41 = vld [vmem:[%s1979_s3 + $0x470] sm:$0xff]  ;;  %v390_v44 = vld [vmem:[%s1979_s3 + $0x478] sm:$0xff] }
  0xef   : > { %1153 = vst [vmem:[%s2001_s29 + $0x450] sm:$0xff] %v897_v33  ;;  %v900_v42 = vadd.f32 %v644_v40, %v388_v39  ;;  %v645_v43 = vld [vmem:[%s1986_s25 + $0x470] sm:$0xff]  ;;  %v646_v45 = vld [vmem:[%s1986_s25 + $0x478] sm:$0xff]  ;;  %1154 = vst [vmem:[%s2001_s29 + $0x458] sm:$0xff] %v898_v37 }
  0xf0   : > { %1155 = vst [vmem:[%s2001_s29 + $0x460] sm:$0xff] %v899_v38  ;;  %v901_v46 = vadd.f32 %v645_v43, %v389_v41  ;;  %v902_v47 = vadd.f32 %v646_v45, %v390_v44  ;;  %v391_v48 = vld [vmem:[%s1979_s3 + $0x480] sm:$0xff]  ;;  %v392_v50 = vld [vmem:[%s1979_s3 + $0x488] sm:$0xff]  ;;  %v393_v53 = vld [vmem:[%s1979_s3 + $0x490] sm:$0xff] }
  0xf1   : > { %v647_v49 = vld [vmem:[%s1986_s25 + $0x480] sm:$0xff]  ;;  %1156 = vst [vmem:[%s2001_s29 + $0x468] sm:$0xff] %v900_v42  ;;  %v648_v52 = vld [vmem:[%s1986_s25 + $0x488] sm:$0xff]  ;;  %v649_v54 = vld [vmem:[%s1986_s25 + $0x490] sm:$0xff] }
  0xf2   : > { %v903_v51 = vadd.f32 %v647_v49, %v391_v48  ;;  %1157 = vst [vmem:[%s2001_s29 + $0x470] sm:$0xff] %v901_v46  ;;  %1158 = vst [vmem:[%s2001_s29 + $0x478] sm:$0xff] %v902_v47  ;;  %v904_v55 = vadd.f32 %v648_v52, %v392_v50  ;;  %v905_v56 = vadd.f32 %v649_v54, %v393_v53  ;;  %v394_v57 = vld [vmem:[%s1979_s3 + $0x498] sm:$0xff]  ;;  %v395_v59 = vld [vmem:[%s1979_s3 + $0x4a0] sm:$0xff] }
  0xf3   : > { %v650_v58 = vld [vmem:[%s1986_s25 + $0x498] sm:$0xff]  ;;  %v651_v61 = vld [vmem:[%s1986_s25 + $0x4a0] sm:$0xff]  ;;  %v396_v62 = vld [vmem:[%s1979_s3 + $0x4a8] sm:$0xff] }
  0xf4   : > { %1159 = vst [vmem:[%s2001_s29 + $0x480] sm:$0xff] %v903_v51  ;;  %v906_v60 = vadd.f32 %v650_v58, %v394_v57  ;;  %v652_v63 = vld [vmem:[%s1986_s25 + $0x4a8] sm:$0xff]  ;;  %1160 = vst [vmem:[%s2001_s29 + $0x488] sm:$0xff] %v904_v55  ;;  %v907_v0 = vadd.f32 %v651_v61, %v395_v59  ;;  %v397_v2 = vld [vmem:[%s1979_s3 + $0x4b0] sm:$0xff] }
  0xf5   : > { %1161 = vst [vmem:[%s2001_s29 + $0x490] sm:$0xff] %v905_v56  ;;  %v908_v1 = vadd.f32 %v652_v63, %v396_v62  ;;  %v653_v3 = vld [vmem:[%s1986_s25 + $0x4b0] sm:$0xff]  ;;  %v398_v4 = vld [vmem:[%s1979_s3 + $0x4b8] sm:$0xff]  ;;  %v399_v7 = vld [vmem:[%s1979_s3 + $0x4c0] sm:$0xff] }
  0xf6   : > { %1162 = vst [vmem:[%s2001_s29 + $0x498] sm:$0xff] %v906_v60  ;;  %v909_v5 = vadd.f32 %v653_v3, %v397_v2  ;;  %v654_v6 = vld [vmem:[%s1986_s25 + $0x4b8] sm:$0xff]  ;;  %v655_v8 = vld [vmem:[%s1986_s25 + $0x4c0] sm:$0xff]  ;;  %1163 = vst [vmem:[%s2001_s29 + $0x4a0] sm:$0xff] %v907_v0 }
  0xf7   : > { %1164 = vst [vmem:[%s2001_s29 + $0x4a8] sm:$0xff] %v908_v1  ;;  %v910_v9 = vadd.f32 %v654_v6, %v398_v4  ;;  %v911_v10 = vadd.f32 %v655_v8, %v399_v7  ;;  %v400_v11 = vld [vmem:[%s1979_s3 + $0x4c8] sm:$0xff]  ;;  %v401_v13 = vld [vmem:[%s1979_s3 + $0x4d0] sm:$0xff]  ;;  %v402_v16 = vld [vmem:[%s1979_s3 + $0x4d8] sm:$0xff] }
  0xf8   : > { %v656_v12 = vld [vmem:[%s1986_s25 + $0x4c8] sm:$0xff]  ;;  %1165 = vst [vmem:[%s2001_s29 + $0x4b0] sm:$0xff] %v909_v5  ;;  %v657_v15 = vld [vmem:[%s1986_s25 + $0x4d0] sm:$0xff]  ;;  %v658_v17 = vld [vmem:[%s1986_s25 + $0x4d8] sm:$0xff] }
  0xf9   : > { %v912_v14 = vadd.f32 %v656_v12, %v400_v11  ;;  %1166 = vst [vmem:[%s2001_s29 + $0x4b8] sm:$0xff] %v910_v9  ;;  %1167 = vst [vmem:[%s2001_s29 + $0x4c0] sm:$0xff] %v911_v10  ;;  %v913_v18 = vadd.f32 %v657_v15, %v401_v13  ;;  %v914_v19 = vadd.f32 %v658_v17, %v402_v16  ;;  %v403_v20 = vld [vmem:[%s1979_s3 + $0x4e0] sm:$0xff]  ;;  %v404_v22 = vld [vmem:[%s1979_s3 + $0x4e8] sm:$0xff] }
  0xfa   : > { %v659_v21 = vld [vmem:[%s1986_s25 + $0x4e0] sm:$0xff]  ;;  %v660_v24 = vld [vmem:[%s1986_s25 + $0x4e8] sm:$0xff]  ;;  %v405_v25 = vld [vmem:[%s1979_s3 + $0x4f0] sm:$0xff] }
  0xfb   : > { %1168 = vst [vmem:[%s2001_s29 + $0x4c8] sm:$0xff] %v912_v14  ;;  %v915_v23 = vadd.f32 %v659_v21, %v403_v20  ;;  %v661_v26 = vld [vmem:[%s1986_s25 + $0x4f0] sm:$0xff]  ;;  %1169 = vst [vmem:[%s2001_s29 + $0x4d0] sm:$0xff] %v913_v18  ;;  %v916_v27 = vadd.f32 %v660_v24, %v404_v22  ;;  %v406_v29 = vld [vmem:[%s1979_s3 + $0x4f8] sm:$0xff] }
  0xfc   : > { %1170 = vst [vmem:[%s2001_s29 + $0x4d8] sm:$0xff] %v914_v19  ;;  %v917_v28 = vadd.f32 %v661_v26, %v405_v25  ;;  %v662_v30 = vld [vmem:[%s1986_s25 + $0x4f8] sm:$0xff]  ;;  %v407_v31 = vld [vmem:[%s1979_s3 + $0x500] sm:$0xff]  ;;  %v408_v34 = vld [vmem:[%s1979_s3 + $0x508] sm:$0xff] }
  0xfd   : > { %1171 = vst [vmem:[%s2001_s29 + $0x4e0] sm:$0xff] %v915_v23  ;;  %v918_v32 = vadd.f32 %v662_v30, %v406_v29  ;;  %v663_v33 = vld [vmem:[%s1986_s25 + $0x500] sm:$0xff]  ;;  %v664_v35 = vld [vmem:[%s1986_s25 + $0x508] sm:$0xff]  ;;  %1172 = vst [vmem:[%s2001_s29 + $0x4e8] sm:$0xff] %v916_v27 }
  0xfe   : > { %1173 = vst [vmem:[%s2001_s29 + $0x4f0] sm:$0xff] %v917_v28  ;;  %v919_v36 = vadd.f32 %v663_v33, %v407_v31  ;;  %v920_v37 = vadd.f32 %v664_v35, %v408_v34  ;;  %v409_v38 = vld [vmem:[%s1979_s3 + $0x510] sm:$0xff]  ;;  %v410_v40 = vld [vmem:[%s1979_s3 + $0x518] sm:$0xff]  ;;  %v411_v43 = vld [vmem:[%s1979_s3 + $0x520] sm:$0xff] }
  0xff   : > { %v665_v39 = vld [vmem:[%s1986_s25 + $0x510] sm:$0xff]  ;;  %1174 = vst [vmem:[%s2001_s29 + $0x4f8] sm:$0xff] %v918_v32  ;;  %v666_v42 = vld [vmem:[%s1986_s25 + $0x518] sm:$0xff]  ;;  %v667_v44 = vld [vmem:[%s1986_s25 + $0x520] sm:$0xff] }
 0x100   : > { %v921_v41 = vadd.f32 %v665_v39, %v409_v38  ;;  %1175 = vst [vmem:[%s2001_s29 + $0x500] sm:$0xff] %v919_v36  ;;  %1176 = vst [vmem:[%s2001_s29 + $0x508] sm:$0xff] %v920_v37  ;;  %v922_v45 = vadd.f32 %v666_v42, %v410_v40  ;;  %v923_v46 = vadd.f32 %v667_v44, %v411_v43  ;;  %v412_v47 = vld [vmem:[%s1979_s3 + $0x528] sm:$0xff]  ;;  %v413_v49 = vld [vmem:[%s1979_s3 + $0x530] sm:$0xff] }
 0x101   : > { %v668_v48 = vld [vmem:[%s1986_s25 + $0x528] sm:$0xff]  ;;  %v669_v51 = vld [vmem:[%s1986_s25 + $0x530] sm:$0xff]  ;;  %v414_v52 = vld [vmem:[%s1979_s3 + $0x538] sm:$0xff] }
 0x102   : > { %1177 = vst [vmem:[%s2001_s29 + $0x510] sm:$0xff] %v921_v41  ;;  %v924_v50 = vadd.f32 %v668_v48, %v412_v47  ;;  %v670_v53 = vld [vmem:[%s1986_s25 + $0x538] sm:$0xff]  ;;  %1178 = vst [vmem:[%s2001_s29 + $0x518] sm:$0xff] %v922_v45  ;;  %v925_v54 = vadd.f32 %v669_v51, %v413_v49  ;;  %v415_v56 = vld [vmem:[%s1979_s3 + $0x540] sm:$0xff] }
 0x103   : > { %1179 = vst [vmem:[%s2001_s29 + $0x520] sm:$0xff] %v923_v46  ;;  %v926_v55 = vadd.f32 %v670_v53, %v414_v52  ;;  %v671_v57 = vld [vmem:[%s1986_s25 + $0x540] sm:$0xff]  ;;  %v416_v58 = vld [vmem:[%s1979_s3 + $0x548] sm:$0xff]  ;;  %v417_v61 = vld [vmem:[%s1979_s3 + $0x550] sm:$0xff] }
 0x104   : > { %1180 = vst [vmem:[%s2001_s29 + $0x528] sm:$0xff] %v924_v50  ;;  %v927_v59 = vadd.f32 %v671_v57, %v415_v56  ;;  %v672_v60 = vld [vmem:[%s1986_s25 + $0x548] sm:$0xff]  ;;  %v673_v62 = vld [vmem:[%s1986_s25 + $0x550] sm:$0xff]  ;;  %1181 = vst [vmem:[%s2001_s29 + $0x530] sm:$0xff] %v925_v54 }
 0x105   : > { %1182 = vst [vmem:[%s2001_s29 + $0x538] sm:$0xff] %v926_v55  ;;  %v928_v63 = vadd.f32 %v672_v60, %v416_v58  ;;  %v929_v0 = vadd.f32 %v673_v62, %v417_v61  ;;  %v418_v1 = vld [vmem:[%s1979_s3 + $0x558] sm:$0xff]  ;;  %v419_v3 = vld [vmem:[%s1979_s3 + $0x560] sm:$0xff]  ;;  %v420_v6 = vld [vmem:[%s1979_s3 + $0x568] sm:$0xff] }
 0x106   : > { %v674_v2 = vld [vmem:[%s1986_s25 + $0x558] sm:$0xff]  ;;  %1183 = vst [vmem:[%s2001_s29 + $0x540] sm:$0xff] %v927_v59  ;;  %v675_v5 = vld [vmem:[%s1986_s25 + $0x560] sm:$0xff]  ;;  %v676_v7 = vld [vmem:[%s1986_s25 + $0x568] sm:$0xff] }
 0x107   : > { %v930_v4 = vadd.f32 %v674_v2, %v418_v1  ;;  %1184 = vst [vmem:[%s2001_s29 + $0x548] sm:$0xff] %v928_v63  ;;  %1185 = vst [vmem:[%s2001_s29 + $0x550] sm:$0xff] %v929_v0  ;;  %v931_v8 = vadd.f32 %v675_v5, %v419_v3  ;;  %v932_v9 = vadd.f32 %v676_v7, %v420_v6  ;;  %v421_v10 = vld [vmem:[%s1979_s3 + $0x570] sm:$0xff]  ;;  %v422_v12 = vld [vmem:[%s1979_s3 + $0x578] sm:$0xff] }
 0x108   : > { %v677_v11 = vld [vmem:[%s1986_s25 + $0x570] sm:$0xff]  ;;  %v678_v14 = vld [vmem:[%s1986_s25 + $0x578] sm:$0xff]  ;;  %v423_v15 = vld [vmem:[%s1979_s3 + $0x580] sm:$0xff] }
 0x109   : > { %1186 = vst [vmem:[%s2001_s29 + $0x558] sm:$0xff] %v930_v4  ;;  %v933_v13 = vadd.f32 %v677_v11, %v421_v10  ;;  %v679_v16 = vld [vmem:[%s1986_s25 + $0x580] sm:$0xff]  ;;  %1187 = vst [vmem:[%s2001_s29 + $0x560] sm:$0xff] %v931_v8  ;;  %v934_v17 = vadd.f32 %v678_v14, %v422_v12  ;;  %v424_v19 = vld [vmem:[%s1979_s3 + $0x588] sm:$0xff] }
 0x10a   : > { %1188 = vst [vmem:[%s2001_s29 + $0x568] sm:$0xff] %v932_v9  ;;  %v935_v18 = vadd.f32 %v679_v16, %v423_v15  ;;  %v680_v20 = vld [vmem:[%s1986_s25 + $0x588] sm:$0xff]  ;;  %v425_v21 = vld [vmem:[%s1979_s3 + $0x590] sm:$0xff]  ;;  %v426_v24 = vld [vmem:[%s1979_s3 + $0x598] sm:$0xff] }
 0x10b   : > { %1189 = vst [vmem:[%s2001_s29 + $0x570] sm:$0xff] %v933_v13  ;;  %v936_v22 = vadd.f32 %v680_v20, %v424_v19  ;;  %v681_v23 = vld [vmem:[%s1986_s25 + $0x590] sm:$0xff]  ;;  %v682_v25 = vld [vmem:[%s1986_s25 + $0x598] sm:$0xff]  ;;  %1190 = vst [vmem:[%s2001_s29 + $0x578] sm:$0xff] %v934_v17 }
 0x10c   : > { %1191 = vst [vmem:[%s2001_s29 + $0x580] sm:$0xff] %v935_v18  ;;  %v937_v26 = vadd.f32 %v681_v23, %v425_v21  ;;  %v938_v27 = vadd.f32 %v682_v25, %v426_v24  ;;  %v427_v28 = vld [vmem:[%s1979_s3 + $0x5a0] sm:$0xff]  ;;  %v428_v30 = vld [vmem:[%s1979_s3 + $0x5a8] sm:$0xff]  ;;  %v429_v33 = vld [vmem:[%s1979_s3 + $0x5b0] sm:$0xff] }
 0x10d   : > { %v683_v29 = vld [vmem:[%s1986_s25 + $0x5a0] sm:$0xff]  ;;  %1192 = vst [vmem:[%s2001_s29 + $0x588] sm:$0xff] %v936_v22  ;;  %v684_v32 = vld [vmem:[%s1986_s25 + $0x5a8] sm:$0xff]  ;;  %v685_v34 = vld [vmem:[%s1986_s25 + $0x5b0] sm:$0xff] }
 0x10e   : > { %v939_v31 = vadd.f32 %v683_v29, %v427_v28  ;;  %1193 = vst [vmem:[%s2001_s29 + $0x590] sm:$0xff] %v937_v26  ;;  %1194 = vst [vmem:[%s2001_s29 + $0x598] sm:$0xff] %v938_v27  ;;  %v940_v35 = vadd.f32 %v684_v32, %v428_v30  ;;  %v941_v36 = vadd.f32 %v685_v34, %v429_v33  ;;  %v430_v37 = vld [vmem:[%s1979_s3 + $0x5b8] sm:$0xff]  ;;  %v431_v39 = vld [vmem:[%s1979_s3 + $0x5c0] sm:$0xff] }
 0x10f   : > { %v686_v38 = vld [vmem:[%s1986_s25 + $0x5b8] sm:$0xff]  ;;  %v687_v41 = vld [vmem:[%s1986_s25 + $0x5c0] sm:$0xff]  ;;  %v432_v42 = vld [vmem:[%s1979_s3 + $0x5c8] sm:$0xff] }
 0x110   : > { %1195 = vst [vmem:[%s2001_s29 + $0x5a0] sm:$0xff] %v939_v31  ;;  %v942_v40 = vadd.f32 %v686_v38, %v430_v37  ;;  %v688_v43 = vld [vmem:[%s1986_s25 + $0x5c8] sm:$0xff]  ;;  %1196 = vst [vmem:[%s2001_s29 + $0x5a8] sm:$0xff] %v940_v35  ;;  %v943_v44 = vadd.f32 %v687_v41, %v431_v39  ;;  %v433_v46 = vld [vmem:[%s1979_s3 + $0x5d0] sm:$0xff] }
 0x111   : > { %1197 = vst [vmem:[%s2001_s29 + $0x5b0] sm:$0xff] %v941_v36  ;;  %v944_v45 = vadd.f32 %v688_v43, %v432_v42  ;;  %v689_v47 = vld [vmem:[%s1986_s25 + $0x5d0] sm:$0xff]  ;;  %v434_v48 = vld [vmem:[%s1979_s3 + $0x5d8] sm:$0xff]  ;;  %v435_v51 = vld [vmem:[%s1979_s3 + $0x5e0] sm:$0xff] }
 0x112   : > { %1198 = vst [vmem:[%s2001_s29 + $0x5b8] sm:$0xff] %v942_v40  ;;  %v945_v49 = vadd.f32 %v689_v47, %v433_v46  ;;  %v690_v50 = vld [vmem:[%s1986_s25 + $0x5d8] sm:$0xff]  ;;  %v691_v52 = vld [vmem:[%s1986_s25 + $0x5e0] sm:$0xff]  ;;  %1199 = vst [vmem:[%s2001_s29 + $0x5c0] sm:$0xff] %v943_v44 }
 0x113   : > { %1200 = vst [vmem:[%s2001_s29 + $0x5c8] sm:$0xff] %v944_v45  ;;  %v946_v53 = vadd.f32 %v690_v50, %v434_v48  ;;  %v947_v54 = vadd.f32 %v691_v52, %v435_v51  ;;  %v436_v55 = vld [vmem:[%s1979_s3 + $0x5e8] sm:$0xff]  ;;  %v437_v57 = vld [vmem:[%s1979_s3 + $0x5f0] sm:$0xff]  ;;  %v438_v60 = vld [vmem:[%s1979_s3 + $0x5f8] sm:$0xff] }
 0x114   : > { %v692_v56 = vld [vmem:[%s1986_s25 + $0x5e8] sm:$0xff]  ;;  %1201 = vst [vmem:[%s2001_s29 + $0x5d0] sm:$0xff] %v945_v49  ;;  %v693_v59 = vld [vmem:[%s1986_s25 + $0x5f0] sm:$0xff]  ;;  %v694_v61 = vld [vmem:[%s1986_s25 + $0x5f8] sm:$0xff] }
 0x115   : > { %v948_v58 = vadd.f32 %v692_v56, %v436_v55  ;;  %1202 = vst [vmem:[%s2001_s29 + $0x5d8] sm:$0xff] %v946_v53  ;;  %1203 = vst [vmem:[%s2001_s29 + $0x5e0] sm:$0xff] %v947_v54  ;;  %v949_v62 = vadd.f32 %v693_v59, %v437_v57  ;;  %v950_v63 = vadd.f32 %v694_v61, %v438_v60  ;;  %v439_v0 = vld [vmem:[%s1979_s3 + $0x600] sm:$0xff]  ;;  %v440_v2 = vld [vmem:[%s1979_s3 + $0x608] sm:$0xff] }
 0x116   : > { %v695_v1 = vld [vmem:[%s1986_s25 + $0x600] sm:$0xff]  ;;  %v696_v4 = vld [vmem:[%s1986_s25 + $0x608] sm:$0xff]  ;;  %v441_v5 = vld [vmem:[%s1979_s3 + $0x610] sm:$0xff] }
 0x117   : > { %1204 = vst [vmem:[%s2001_s29 + $0x5e8] sm:$0xff] %v948_v58  ;;  %v951_v3 = vadd.f32 %v695_v1, %v439_v0  ;;  %v697_v6 = vld [vmem:[%s1986_s25 + $0x610] sm:$0xff]  ;;  %1205 = vst [vmem:[%s2001_s29 + $0x5f0] sm:$0xff] %v949_v62  ;;  %v952_v7 = vadd.f32 %v696_v4, %v440_v2  ;;  %v442_v9 = vld [vmem:[%s1979_s3 + $0x618] sm:$0xff] }
 0x118   : > { %1206 = vst [vmem:[%s2001_s29 + $0x5f8] sm:$0xff] %v950_v63  ;;  %v953_v8 = vadd.f32 %v697_v6, %v441_v5  ;;  %v698_v10 = vld [vmem:[%s1986_s25 + $0x618] sm:$0xff]  ;;  %v443_v11 = vld [vmem:[%s1979_s3 + $0x620] sm:$0xff]  ;;  %v444_v14 = vld [vmem:[%s1979_s3 + $0x628] sm:$0xff] }
 0x119   : > { %1207 = vst [vmem:[%s2001_s29 + $0x600] sm:$0xff] %v951_v3  ;;  %v954_v12 = vadd.f32 %v698_v10, %v442_v9  ;;  %v699_v13 = vld [vmem:[%s1986_s25 + $0x620] sm:$0xff]  ;;  %v700_v15 = vld [vmem:[%s1986_s25 + $0x628] sm:$0xff]  ;;  %1208 = vst [vmem:[%s2001_s29 + $0x608] sm:$0xff] %v952_v7 }
 0x11a   : > { %1209 = vst [vmem:[%s2001_s29 + $0x610] sm:$0xff] %v953_v8  ;;  %v955_v16 = vadd.f32 %v699_v13, %v443_v11  ;;  %v956_v17 = vadd.f32 %v700_v15, %v444_v14  ;;  %v445_v18 = vld [vmem:[%s1979_s3 + $0x630] sm:$0xff]  ;;  %v446_v20 = vld [vmem:[%s1979_s3 + $0x638] sm:$0xff]  ;;  %v447_v23 = vld [vmem:[%s1979_s3 + $0x640] sm:$0xff] }
 0x11b   : > { %v701_v19 = vld [vmem:[%s1986_s25 + $0x630] sm:$0xff]  ;;  %1210 = vst [vmem:[%s2001_s29 + $0x618] sm:$0xff] %v954_v12  ;;  %v702_v22 = vld [vmem:[%s1986_s25 + $0x638] sm:$0xff]  ;;  %v703_v24 = vld [vmem:[%s1986_s25 + $0x640] sm:$0xff] }
 0x11c   : > { %v957_v21 = vadd.f32 %v701_v19, %v445_v18  ;;  %1211 = vst [vmem:[%s2001_s29 + $0x620] sm:$0xff] %v955_v16  ;;  %1212 = vst [vmem:[%s2001_s29 + $0x628] sm:$0xff] %v956_v17  ;;  %v958_v25 = vadd.f32 %v702_v22, %v446_v20  ;;  %v959_v26 = vadd.f32 %v703_v24, %v447_v23  ;;  %v448_v27 = vld [vmem:[%s1979_s3 + $0x648] sm:$0xff]  ;;  %v449_v29 = vld [vmem:[%s1979_s3 + $0x650] sm:$0xff] }
 0x11d   : > { %v704_v28 = vld [vmem:[%s1986_s25 + $0x648] sm:$0xff]  ;;  %v705_v31 = vld [vmem:[%s1986_s25 + $0x650] sm:$0xff]  ;;  %v450_v32 = vld [vmem:[%s1979_s3 + $0x658] sm:$0xff] }
 0x11e   : > { %1213 = vst [vmem:[%s2001_s29 + $0x630] sm:$0xff] %v957_v21  ;;  %v960_v30 = vadd.f32 %v704_v28, %v448_v27  ;;  %v706_v33 = vld [vmem:[%s1986_s25 + $0x658] sm:$0xff]  ;;  %1214 = vst [vmem:[%s2001_s29 + $0x638] sm:$0xff] %v958_v25  ;;  %v961_v34 = vadd.f32 %v705_v31, %v449_v29  ;;  %v451_v36 = vld [vmem:[%s1979_s3 + $0x660] sm:$0xff] }
 0x11f   : > { %1215 = vst [vmem:[%s2001_s29 + $0x640] sm:$0xff] %v959_v26  ;;  %v962_v35 = vadd.f32 %v706_v33, %v450_v32  ;;  %v707_v37 = vld [vmem:[%s1986_s25 + $0x660] sm:$0xff]  ;;  %v452_v38 = vld [vmem:[%s1979_s3 + $0x668] sm:$0xff]  ;;  %v453_v41 = vld [vmem:[%s1979_s3 + $0x670] sm:$0xff] }
 0x120   : > { %1216 = vst [vmem:[%s2001_s29 + $0x648] sm:$0xff] %v960_v30  ;;  %v963_v39 = vadd.f32 %v707_v37, %v451_v36  ;;  %v708_v40 = vld [vmem:[%s1986_s25 + $0x668] sm:$0xff]  ;;  %v709_v42 = vld [vmem:[%s1986_s25 + $0x670] sm:$0xff]  ;;  %1217 = vst [vmem:[%s2001_s29 + $0x650] sm:$0xff] %v961_v34 }
 0x121   : > { %1218 = vst [vmem:[%s2001_s29 + $0x658] sm:$0xff] %v962_v35  ;;  %v964_v43 = vadd.f32 %v708_v40, %v452_v38  ;;  %v965_v44 = vadd.f32 %v709_v42, %v453_v41  ;;  %v454_v45 = vld [vmem:[%s1979_s3 + $0x678] sm:$0xff]  ;;  %v455_v47 = vld [vmem:[%s1979_s3 + $0x680] sm:$0xff]  ;;  %v456_v50 = vld [vmem:[%s1979_s3 + $0x688] sm:$0xff] }
 0x122   : > { %v710_v46 = vld [vmem:[%s1986_s25 + $0x678] sm:$0xff]  ;;  %1219 = vst [vmem:[%s2001_s29 + $0x660] sm:$0xff] %v963_v39  ;;  %v711_v49 = vld [vmem:[%s1986_s25 + $0x680] sm:$0xff]  ;;  %v712_v51 = vld [vmem:[%s1986_s25 + $0x688] sm:$0xff] }
 0x123   : > { %v966_v48 = vadd.f32 %v710_v46, %v454_v45  ;;  %1220 = vst [vmem:[%s2001_s29 + $0x668] sm:$0xff] %v964_v43  ;;  %1221 = vst [vmem:[%s2001_s29 + $0x670] sm:$0xff] %v965_v44  ;;  %v967_v52 = vadd.f32 %v711_v49, %v455_v47  ;;  %v968_v53 = vadd.f32 %v712_v51, %v456_v50  ;;  %v457_v54 = vld [vmem:[%s1979_s3 + $0x690] sm:$0xff]  ;;  %v458_v56 = vld [vmem:[%s1979_s3 + $0x698] sm:$0xff] }
 0x124   : > { %v713_v55 = vld [vmem:[%s1986_s25 + $0x690] sm:$0xff]  ;;  %v714_v58 = vld [vmem:[%s1986_s25 + $0x698] sm:$0xff]  ;;  %v459_v59 = vld [vmem:[%s1979_s3 + $0x6a0] sm:$0xff] }
 0x125   : > { %1222 = vst [vmem:[%s2001_s29 + $0x678] sm:$0xff] %v966_v48  ;;  %v969_v57 = vadd.f32 %v713_v55, %v457_v54  ;;  %v715_v60 = vld [vmem:[%s1986_s25 + $0x6a0] sm:$0xff]  ;;  %1223 = vst [vmem:[%s2001_s29 + $0x680] sm:$0xff] %v967_v52  ;;  %v970_v61 = vadd.f32 %v714_v58, %v458_v56  ;;  %v460_v63 = vld [vmem:[%s1979_s3 + $0x6a8] sm:$0xff] }
 0x126   : > { %1224 = vst [vmem:[%s2001_s29 + $0x688] sm:$0xff] %v968_v53  ;;  %v971_v62 = vadd.f32 %v715_v60, %v459_v59  ;;  %v716_v0 = vld [vmem:[%s1986_s25 + $0x6a8] sm:$0xff]  ;;  %v461_v1 = vld [vmem:[%s1979_s3 + $0x6b0] sm:$0xff]  ;;  %v462_v4 = vld [vmem:[%s1979_s3 + $0x6b8] sm:$0xff] }
 0x127   : > { %1225 = vst [vmem:[%s2001_s29 + $0x690] sm:$0xff] %v969_v57  ;;  %v972_v2 = vadd.f32 %v716_v0, %v460_v63  ;;  %v717_v3 = vld [vmem:[%s1986_s25 + $0x6b0] sm:$0xff]  ;;  %v718_v5 = vld [vmem:[%s1986_s25 + $0x6b8] sm:$0xff]  ;;  %1226 = vst [vmem:[%s2001_s29 + $0x698] sm:$0xff] %v970_v61 }
 0x128   : > { %1227 = vst [vmem:[%s2001_s29 + $0x6a0] sm:$0xff] %v971_v62  ;;  %v973_v6 = vadd.f32 %v717_v3, %v461_v1  ;;  %v974_v7 = vadd.f32 %v718_v5, %v462_v4  ;;  %v463_v8 = vld [vmem:[%s1979_s3 + $0x6c0] sm:$0xff]  ;;  %v464_v10 = vld [vmem:[%s1979_s3 + $0x6c8] sm:$0xff]  ;;  %v465_v13 = vld [vmem:[%s1979_s3 + $0x6d0] sm:$0xff] }
 0x129   : > { %v719_v9 = vld [vmem:[%s1986_s25 + $0x6c0] sm:$0xff]  ;;  %1228 = vst [vmem:[%s2001_s29 + $0x6a8] sm:$0xff] %v972_v2  ;;  %v720_v12 = vld [vmem:[%s1986_s25 + $0x6c8] sm:$0xff]  ;;  %v721_v14 = vld [vmem:[%s1986_s25 + $0x6d0] sm:$0xff] }
 0x12a   : > { %v975_v11 = vadd.f32 %v719_v9, %v463_v8  ;;  %1229 = vst [vmem:[%s2001_s29 + $0x6b0] sm:$0xff] %v973_v6  ;;  %1230 = vst [vmem:[%s2001_s29 + $0x6b8] sm:$0xff] %v974_v7  ;;  %v976_v15 = vadd.f32 %v720_v12, %v464_v10  ;;  %v977_v16 = vadd.f32 %v721_v14, %v465_v13  ;;  %v466_v17 = vld [vmem:[%s1979_s3 + $0x6d8] sm:$0xff]  ;;  %v467_v19 = vld [vmem:[%s1979_s3 + $0x6e0] sm:$0xff] }
 0x12b   : > { %v722_v18 = vld [vmem:[%s1986_s25 + $0x6d8] sm:$0xff]  ;;  %v723_v21 = vld [vmem:[%s1986_s25 + $0x6e0] sm:$0xff]  ;;  %v468_v22 = vld [vmem:[%s1979_s3 + $0x6e8] sm:$0xff] }
 0x12c   : > { %1231 = vst [vmem:[%s2001_s29 + $0x6c0] sm:$0xff] %v975_v11  ;;  %v978_v20 = vadd.f32 %v722_v18, %v466_v17  ;;  %v724_v23 = vld [vmem:[%s1986_s25 + $0x6e8] sm:$0xff]  ;;  %1232 = vst [vmem:[%s2001_s29 + $0x6c8] sm:$0xff] %v976_v15  ;;  %v979_v24 = vadd.f32 %v723_v21, %v467_v19  ;;  %v469_v26 = vld [vmem:[%s1979_s3 + $0x6f0] sm:$0xff] }
 0x12d   : > { %1233 = vst [vmem:[%s2001_s29 + $0x6d0] sm:$0xff] %v977_v16  ;;  %v980_v25 = vadd.f32 %v724_v23, %v468_v22  ;;  %v725_v27 = vld [vmem:[%s1986_s25 + $0x6f0] sm:$0xff]  ;;  %v470_v28 = vld [vmem:[%s1979_s3 + $0x6f8] sm:$0xff]  ;;  %v471_v31 = vld [vmem:[%s1979_s3 + $0x700] sm:$0xff] }
 0x12e   : > { %1234 = vst [vmem:[%s2001_s29 + $0x6d8] sm:$0xff] %v978_v20  ;;  %v981_v29 = vadd.f32 %v725_v27, %v469_v26  ;;  %v726_v30 = vld [vmem:[%s1986_s25 + $0x6f8] sm:$0xff]  ;;  %v727_v32 = vld [vmem:[%s1986_s25 + $0x700] sm:$0xff]  ;;  %1235 = vst [vmem:[%s2001_s29 + $0x6e0] sm:$0xff] %v979_v24 }
 0x12f   : > { %1236 = vst [vmem:[%s2001_s29 + $0x6e8] sm:$0xff] %v980_v25  ;;  %v982_v33 = vadd.f32 %v726_v30, %v470_v28  ;;  %v983_v34 = vadd.f32 %v727_v32, %v471_v31  ;;  %v472_v35 = vld [vmem:[%s1979_s3 + $0x708] sm:$0xff]  ;;  %v473_v37 = vld [vmem:[%s1979_s3 + $0x710] sm:$0xff]  ;;  %v474_v40 = vld [vmem:[%s1979_s3 + $0x718] sm:$0xff] }
 0x130   : > { %v728_v36 = vld [vmem:[%s1986_s25 + $0x708] sm:$0xff]  ;;  %1237 = vst [vmem:[%s2001_s29 + $0x6f0] sm:$0xff] %v981_v29  ;;  %v729_v39 = vld [vmem:[%s1986_s25 + $0x710] sm:$0xff]  ;;  %v730_v41 = vld [vmem:[%s1986_s25 + $0x718] sm:$0xff] }
 0x131   : > { %v984_v38 = vadd.f32 %v728_v36, %v472_v35  ;;  %1238 = vst [vmem:[%s2001_s29 + $0x6f8] sm:$0xff] %v982_v33  ;;  %1239 = vst [vmem:[%s2001_s29 + $0x700] sm:$0xff] %v983_v34  ;;  %v985_v42 = vadd.f32 %v729_v39, %v473_v37  ;;  %v986_v43 = vadd.f32 %v730_v41, %v474_v40  ;;  %v475_v44 = vld [vmem:[%s1979_s3 + $0x720] sm:$0xff]  ;;  %v476_v46 = vld [vmem:[%s1979_s3 + $0x728] sm:$0xff] }
 0x132   : > { %v731_v45 = vld [vmem:[%s1986_s25 + $0x720] sm:$0xff]  ;;  %v732_v48 = vld [vmem:[%s1986_s25 + $0x728] sm:$0xff]  ;;  %v477_v49 = vld [vmem:[%s1979_s3 + $0x730] sm:$0xff] }
 0x133   : > { %1240 = vst [vmem:[%s2001_s29 + $0x708] sm:$0xff] %v984_v38  ;;  %v987_v47 = vadd.f32 %v731_v45, %v475_v44  ;;  %v733_v50 = vld [vmem:[%s1986_s25 + $0x730] sm:$0xff]  ;;  %1241 = vst [vmem:[%s2001_s29 + $0x710] sm:$0xff] %v985_v42  ;;  %v988_v51 = vadd.f32 %v732_v48, %v476_v46  ;;  %v478_v53 = vld [vmem:[%s1979_s3 + $0x738] sm:$0xff] }
 0x134   : > { %1242 = vst [vmem:[%s2001_s29 + $0x718] sm:$0xff] %v986_v43  ;;  %v989_v52 = vadd.f32 %v733_v50, %v477_v49  ;;  %v734_v54 = vld [vmem:[%s1986_s25 + $0x738] sm:$0xff]  ;;  %v479_v55 = vld [vmem:[%s1979_s3 + $0x740] sm:$0xff]  ;;  %v480_v58 = vld [vmem:[%s1979_s3 + $0x748] sm:$0xff] }
 0x135   : > { %1243 = vst [vmem:[%s2001_s29 + $0x720] sm:$0xff] %v987_v47  ;;  %v990_v56 = vadd.f32 %v734_v54, %v478_v53  ;;  %v735_v57 = vld [vmem:[%s1986_s25 + $0x740] sm:$0xff]  ;;  %v736_v59 = vld [vmem:[%s1986_s25 + $0x748] sm:$0xff]  ;;  %1244 = vst [vmem:[%s2001_s29 + $0x728] sm:$0xff] %v988_v51 }
 0x136   : > { %1245 = vst [vmem:[%s2001_s29 + $0x730] sm:$0xff] %v989_v52  ;;  %v991_v60 = vadd.f32 %v735_v57, %v479_v55  ;;  %v992_v61 = vadd.f32 %v736_v59, %v480_v58  ;;  %v481_v62 = vld [vmem:[%s1979_s3 + $0x750] sm:$0xff]  ;;  %v482_v0 = vld [vmem:[%s1979_s3 + $0x758] sm:$0xff]  ;;  %v483_v3 = vld [vmem:[%s1979_s3 + $0x760] sm:$0xff] }
 0x137   : > { %v737_v63 = vld [vmem:[%s1986_s25 + $0x750] sm:$0xff]  ;;  %1246 = vst [vmem:[%s2001_s29 + $0x738] sm:$0xff] %v990_v56  ;;  %v738_v2 = vld [vmem:[%s1986_s25 + $0x758] sm:$0xff]  ;;  %v739_v4 = vld [vmem:[%s1986_s25 + $0x760] sm:$0xff] }
 0x138   : > { %v993_v1 = vadd.f32 %v737_v63, %v481_v62  ;;  %1247 = vst [vmem:[%s2001_s29 + $0x740] sm:$0xff] %v991_v60  ;;  %1248 = vst [vmem:[%s2001_s29 + $0x748] sm:$0xff] %v992_v61  ;;  %v994_v5 = vadd.f32 %v738_v2, %v482_v0  ;;  %v995_v6 = vadd.f32 %v739_v4, %v483_v3  ;;  %v484_v7 = vld [vmem:[%s1979_s3 + $0x768] sm:$0xff]  ;;  %v485_v9 = vld [vmem:[%s1979_s3 + $0x770] sm:$0xff] }
 0x139   : > { %v740_v8 = vld [vmem:[%s1986_s25 + $0x768] sm:$0xff]  ;;  %v741_v11 = vld [vmem:[%s1986_s25 + $0x770] sm:$0xff]  ;;  %v486_v12 = vld [vmem:[%s1979_s3 + $0x778] sm:$0xff] }
 0x13a   : > { %1249 = vst [vmem:[%s2001_s29 + $0x750] sm:$0xff] %v993_v1  ;;  %v996_v10 = vadd.f32 %v740_v8, %v484_v7  ;;  %v742_v13 = vld [vmem:[%s1986_s25 + $0x778] sm:$0xff]  ;;  %1250 = vst [vmem:[%s2001_s29 + $0x758] sm:$0xff] %v994_v5  ;;  %v997_v14 = vadd.f32 %v741_v11, %v485_v9  ;;  %v487_v16 = vld [vmem:[%s1979_s3 + $0x780] sm:$0xff] }
 0x13b   : > { %1251 = vst [vmem:[%s2001_s29 + $0x760] sm:$0xff] %v995_v6  ;;  %v998_v15 = vadd.f32 %v742_v13, %v486_v12  ;;  %v743_v17 = vld [vmem:[%s1986_s25 + $0x780] sm:$0xff]  ;;  %v488_v18 = vld [vmem:[%s1979_s3 + $0x788] sm:$0xff]  ;;  %v489_v21 = vld [vmem:[%s1979_s3 + $0x790] sm:$0xff] }
 0x13c   : > { %1252 = vst [vmem:[%s2001_s29 + $0x768] sm:$0xff] %v996_v10  ;;  %v999_v19 = vadd.f32 %v743_v17, %v487_v16  ;;  %v744_v20 = vld [vmem:[%s1986_s25 + $0x788] sm:$0xff]  ;;  %v745_v22 = vld [vmem:[%s1986_s25 + $0x790] sm:$0xff]  ;;  %1253 = vst [vmem:[%s2001_s29 + $0x770] sm:$0xff] %v997_v14 }
 0x13d   : > { %1254 = vst [vmem:[%s2001_s29 + $0x778] sm:$0xff] %v998_v15  ;;  %v1000_v23 = vadd.f32 %v744_v20, %v488_v18  ;;  %v1001_v24 = vadd.f32 %v745_v22, %v489_v21  ;;  %v490_v25 = vld [vmem:[%s1979_s3 + $0x798] sm:$0xff]  ;;  %v491_v27 = vld [vmem:[%s1979_s3 + $0x7a0] sm:$0xff]  ;;  %v492_v30 = vld [vmem:[%s1979_s3 + $0x7a8] sm:$0xff] }
 0x13e   : > { %v746_v26 = vld [vmem:[%s1986_s25 + $0x798] sm:$0xff]  ;;  %1255 = vst [vmem:[%s2001_s29 + $0x780] sm:$0xff] %v999_v19  ;;  %v747_v29 = vld [vmem:[%s1986_s25 + $0x7a0] sm:$0xff]  ;;  %v748_v31 = vld [vmem:[%s1986_s25 + $0x7a8] sm:$0xff] }
 0x13f   : > { %v1002_v28 = vadd.f32 %v746_v26, %v490_v25  ;;  %1256 = vst [vmem:[%s2001_s29 + $0x788] sm:$0xff] %v1000_v23  ;;  %1257 = vst [vmem:[%s2001_s29 + $0x790] sm:$0xff] %v1001_v24  ;;  %v1003_v32 = vadd.f32 %v747_v29, %v491_v27  ;;  %v1004_v33 = vadd.f32 %v748_v31, %v492_v30  ;;  %v493_v34 = vld [vmem:[%s1979_s3 + $0x7b0] sm:$0xff]  ;;  %v494_v36 = vld [vmem:[%s1979_s3 + $0x7b8] sm:$0xff] }
 0x140   : > { %v749_v35 = vld [vmem:[%s1986_s25 + $0x7b0] sm:$0xff]  ;;  %v750_v38 = vld [vmem:[%s1986_s25 + $0x7b8] sm:$0xff]  ;;  %v495_v39 = vld [vmem:[%s1979_s3 + $0x7c0] sm:$0xff] }
 0x141   : > { %1258 = vst [vmem:[%s2001_s29 + $0x798] sm:$0xff] %v1002_v28  ;;  %v1005_v37 = vadd.f32 %v749_v35, %v493_v34  ;;  %v751_v40 = vld [vmem:[%s1986_s25 + $0x7c0] sm:$0xff]  ;;  %1259 = vst [vmem:[%s2001_s29 + $0x7a0] sm:$0xff] %v1003_v32  ;;  %v1006_v41 = vadd.f32 %v750_v38, %v494_v36  ;;  %v496_v43 = vld [vmem:[%s1979_s3 + $0x7c8] sm:$0xff] }
 0x142   : > { %1260 = vst [vmem:[%s2001_s29 + $0x7a8] sm:$0xff] %v1004_v33  ;;  %v1007_v42 = vadd.f32 %v751_v40, %v495_v39  ;;  %v752_v44 = vld [vmem:[%s1986_s25 + $0x7c8] sm:$0xff]  ;;  %v497_v45 = vld [vmem:[%s1979_s3 + $0x7d0] sm:$0xff]  ;;  %v498_v48 = vld [vmem:[%s1979_s3 + $0x7d8] sm:$0xff] }
 0x143   : > { %1261 = vst [vmem:[%s2001_s29 + $0x7b0] sm:$0xff] %v1005_v37  ;;  %v1008_v46 = vadd.f32 %v752_v44, %v496_v43  ;;  %v753_v47 = vld [vmem:[%s1986_s25 + $0x7d0] sm:$0xff]  ;;  %v754_v49 = vld [vmem:[%s1986_s25 + $0x7d8] sm:$0xff]  ;;  %1262 = vst [vmem:[%s2001_s29 + $0x7b8] sm:$0xff] %v1006_v41 }
 0x144   : > { %1263 = vst [vmem:[%s2001_s29 + $0x7c0] sm:$0xff] %v1007_v42  ;;  %v1009_v50 = vadd.f32 %v753_v47, %v497_v45  ;;  %v1010_v51 = vadd.f32 %v754_v49, %v498_v48  ;;  %v499_v52 = vld [vmem:[%s1979_s3 + $0x7e0] sm:$0xff]  ;;  %v500_v54 = vld [vmem:[%s1979_s3 + $0x7e8] sm:$0xff]  ;;  %v501_v57 = vld [vmem:[%s1979_s3 + $0x7f0] sm:$0xff]  ;;  %1278 = sbr.rel (!%p2866_p7) target bundleno = 360 (0x168), region = 40 }
 0x145   : > { %v755_v53 = vld [vmem:[%s1986_s25 + $0x7e0] sm:$0xff]  ;;  %1264 = vst [vmem:[%s2001_s29 + $0x7c8] sm:$0xff] %v1008_v46  ;;  %v756_v56 = vld [vmem:[%s1986_s25 + $0x7e8] sm:$0xff]  ;;  %v757_v58 = vld [vmem:[%s1986_s25 + $0x7f0] sm:$0xff] }
 0x146   : > { %v1011_v55 = vadd.f32 %v755_v53, %v499_v52  ;;  %1265 = vst [vmem:[%s2001_s29 + $0x7d0] sm:$0xff] %v1009_v50  ;;  %1266 = vst [vmem:[%s2001_s29 + $0x7d8] sm:$0xff] %v1010_v51  ;;  %v1012_v59 = vadd.f32 %v756_v56, %v500_v54  ;;  %v1013_v60 = vadd.f32 %v757_v58, %v501_v57  ;;  %v502_v61 = vld [vmem:[%s1979_s3 + $0x7f8] sm:$0xff] }
 0x147   : > { %v758_v62 = vld [vmem:[%s1986_s25 + $0x7f8] sm:$0xff] }
 0x148   : > { %1267 = vst [vmem:[%s2001_s29 + $0x7e0] sm:$0xff] %v1011_v55  ;;  %v1014_v63 = vadd.f32 %v758_v62, %v502_v61  ;;  %1268 = vst [vmem:[%s2001_s29 + $0x7e8] sm:$0xff] %v1012_v59 }
 0x149   : > { %1269 = vst [vmem:[%s2001_s29 + $0x7f0] sm:$0xff] %v1013_v60 }
 0x14a   : > { %1270 = vst [vmem:[%s2001_s29 + $0x7f8] sm:$0xff] %v1014_v63 }
 0x14b   : > { %s2893_s6 = smov (!%p1281_p9, %s1280_s6), 256 }
 0x14c   : > { %s2766_s23 = sshll.u32 %s2893_s6, 7 }
 0x14d   : > { %s1285_s4 = ssub.s32 32768, %s2766_s23 }
 0x14e   : > { %1286 = vsyncadd %s1272_s7, %s1285_s4  ;;  %p1431_p0 = scmp.ne.s32.totalorder %s2766_s23, 0  ;;  %s1439_s8 = smul.u32 312, %s1708_s15 }
 0x14f   : > { %s1293_s5 = sshll.u32 %s2001_s29, 4  ;;  %s1732_s14 = smov [#allocation7]   ;;  %s2774_s5 = int_to_ptr.vmem [resolvable:$true] %s1293_s5 }
 0x150   : > { %s1289_s27 = sadd.s32 %s1439_s8, %s1429_s22  ;;  %s1598_s3 = scalar_lea.vmem %s2774_s5, %s2766_s23 }
 0x151   : > { %s1432_s16 = sshll.u32 %s1289_s27, 7  ;;  %p1599_p4 = scmp.ne.s32.totalorder %s2774_s5, %s1598_s3 }
 0x152   : > { %s2779_s21 = scalar_lea.hbm %s2846_s2, %s1432_s16  ;;  %s1602_s15 = sshll.u32 %s1732_s14, 4  ;;  %s1603_s15 = int_to_ptr.vmem [resolvable:$false] %s1602_s15 }
 0x153   : > { %p1600_p2 = pnand %p1599_p4, %p1431_p0  ;;  %s1604_s26 = scalar_lea.vmem %s1603_s15, 65536 }
 0x154   : > { %p1605_p13 = scmp.lt.s32.totalorder %s2774_s5, %s1603_s15  ;;  %p1606_p8 = scmp.lt.s32.totalorder %s1604_s26, %s1598_s3 }
 0x155   : > { %p1601_p5 = pneg %p1600_p2 }
 0x156   : > { %p1607_p11 = por %p1606_p8, %p1605_p13 }
 0x158   : > { %p1608_p10 = pnand %p1607_p11, %p1601_p5 }
 0x15a   : > { %1611 = shalt.err (!%p1608_p10)
}
 0x15b   : > { %s1612_s30 = scalar_lea.hbm %s2779_s21, %s2766_s23  ;;  %s1616_s22 = scalar_lea.hbm %s2846_s2, 79872 }
 0x15c   : > { %p1613_p3 = scmp.ne.s32.totalorder %s2779_s21, %s1612_s30  ;;  %p1617_p12 = scmp.lt.u32.totalorder %s2779_s21, %s2846_s2 }
 0x15d   : > { %p1618_p7 = scmp.lt.u32.totalorder %s1616_s22, %s1612_s30  ;;  %p1620_p4 = scmp.lt.u32.totalorder %s1612_s30, %s2779_s21 }
 0x15e   : > { %p1614_p1 = pnand %p1613_p3, %p1431_p0 }
 0x15f   : > { %p1619_p9 = por %p1618_p7, %p1617_p12 }
 0x160   : > { %p1615_p6 = pneg %p1614_p1 }
 0x161   : > { %p1621_p2 = por %p1620_p4, %p1619_p9 }
 0x163   : > { %p1622_p5 = pnand %p1621_p2, %p1615_p6 }
 0x165   : > { %1625 = shalt.err (!%p1622_p5)
}
 0x166   : > { %s1733_s8 = smov 128   ;;  %s1734_s27 = smov 8  }
 0x167   : > { %1299 = dma.vmem_to_hbm [thread:$0]  (%p1431_p0), %s2774_s5, %s2766_s23, %s2779_s21, %s1272_s7, %s1733_s8, %s1733_s8, %s1734_s27  }
 0x168 PF: > { %p1447_p13 = scmp.ge.s32.totalorder %s1724_s19, 2  ;;  %s1308_s16 = sand.u32 1, %s1696_s12  }
 0x169   : > { %p2867_p8 = scmp.ne.s32.totalorder %s2864_s9, 0  ;;  %s1309_s20 = scalar_lea.sflag [#allocation4], %s1308_s16 }
 0x16b   : > { %p1444_p11 = pnand %p1447_p13, %p2867_p8 }
 0x16d   : > { %1679 = dma.done.wait (!%p1444_p11), %s1309_s20, 32768  }
 0x16e   : > { %1681 = vsyncadd (!%p1444_p11), %s1309_s20, 4294934528  ;;  %s21_s19 = sadd.s32 1, %s1724_s19   ;;  %s2868_s28 = sld [smem:[#allocation14_spill]] }
 0x16f   : > { %p18_p10 = scmp.ge.s32.totalorder %s21_s19, 6   ;;  %s2869_s24 = sld [smem:[#allocation11_spill]] }
 0x170   : > { %s2870_s14 = sld [smem:[#allocation15_spill]]  ;;  %s2871_s7 = sld [smem:[#allocation12_spill]] }
 0x171   : > { %s2872_s23 = sld [smem:[#allocation13_spill]]  ;;  %s2873_s9 = smov %s1688_s10 }
 0x172   : > { %s2874_s10 = smov %s1692_s11  ;;  %s2876_s12 = smov %s1700_s13 }
 0x173   : > { %s2878_s15 = smov %s1716_s17  ;;  %s2879_s16 = smov %s1720_s18 }
 0x174   : > { %s2875_s11 = smov %s2868_s28  ;;  %20 = sbr.rel (!%p18_p10) target bundleno = 11 (0xb), region = 86 }
 0x175   : > { %s2877_s13 = smov %s2869_s24 }
 0x176   : > { %s2880_s17 = smov %s2871_s7 }
 0x177   : > { %s2881_s18 = smov %s2872_s23 }
 0x17b   :  { %1314 = vsyncpa [#allocation3], 1 }
 0x17c   :  { %1316 = vsyncpa [#allocation3 + $0x1], 1 }
 0x17d   :  { %1317 = vsyncpa [#allocation6], 1 }
 0x17e   :  { %1319 = vsyncpa [#allocation6 + $0x1], 1 }
 0x17f   :  { %1320 = vsyncpa [#allocation4], 1 }
 0x180   :  { %1322 = vsyncpa [#allocation4 + $0x1], 1 }

</bundles_post_ra>
